<compile_context>
chip_gen: v6e
topology: v6e:2x2x1
jax: 0.10.0
libtpu: 0.0.40
codegen_flags: <defaults>
</compile_context>

<pallas_src>
import functools
import math

import jax
import jax.numpy as jnp
from jax import lax
from jax.experimental import pallas as pl
from jax.experimental.pallas import tpu as pltpu

EPS = 1e-5  # torch nn.LayerNorm default


# ------------------------------- Pallas kernel -------------------------------
def _magneto_kernel(x_ref, wqkv_ref, bqkv_ref, wp_ref, wpcs_ref, bp_ref,
                    cq_ref, aq_ref, bq_ref, ck_ref, ak_ref, bk_ref,
                    o_ref, xn_sc, sum_sc, sq_sc, *, n_groups, hpg):
    """Processes one batch element (N, C) per grid step."""
    N, C = x_ref.shape
    gw = wqkv_ref.shape[2] // 3            # head-group width (2 * head_dim for pairs)
    hd = gw // hpg

    # -- norm0 (affine already folded into wqkv / bqkv) -----------------------
    x = x_ref[...]
    mu0 = jnp.mean(x, axis=-1, keepdims=True)
    var0 = jnp.mean((x - mu0) ** 2, axis=-1, keepdims=True)
    xn_sc[...] = ((x - mu0) * lax.rsqrt(var0 + EPS)).astype(jnp.bfloat16)

    # running projection accumulator (lane-dense, full (N, C)) + LN1 row stats
    o_ref[...] = jnp.zeros_like(o_ref)
    sum_sc[...] = jnp.zeros_like(sum_sc)
    sq_sc[...] = jnp.zeros_like(sq_sc)

    # -- per head-group: qkv slice -> rotary -> attention -> proj partial -----
    @pl.loop(0, n_groups)
    def _(g):
        xn = xn_sc[...]                                              # (N, C) bf16
        qkv = jnp.dot(xn, wqkv_ref[g],
                      preferred_element_type=jnp.float32) + bqkv_ref[g]  # (N, 3*gw)
        q = qkv[:, :gw]
        k = qkv[:, gw:2 * gw]
        v = qkv[:, 2 * gw:]

        # XPos rotary with pre-folded tables:
        #   out[j] = t[j]*c[j] + t[j+1]*a[j] + t[j-1]*b[j]
        # a/b carry the even/odd selection and +/-sin*scale (q tables also carry
        # 1/sqrt(hd)); the circular-roll wrap lanes land where a/b are zero and
        # the group width gw is even, so the group-local roll is exact.
        q = (q * cq_ref[g]
             + pltpu.roll(q, shift=gw - 1, axis=1) * aq_ref[g]
             + pltpu.roll(q, shift=1, axis=1) * bq_ref[g])
        k = (k * ck_ref[g]
             + pltpu.roll(k, shift=gw - 1, axis=1) * ak_ref[g]
             + pltpu.roll(k, shift=1, axis=1) * bk_ref[g])
        q = q.astype(jnp.bfloat16)
        k = k.astype(jnp.bfloat16)
        v = v.astype(jnp.bfloat16)

        outs = []
        for h in range(hpg):                 # tiny static loop (<= 2 bodies)
            c0, c1 = h * hd, (h + 1) * hd
            qh, kh, vh = q[:, c0:c1], k[:, c0:c1], v[:, c0:c1]
            s = lax.dot_general(qh, kh, (((1,), (1,)), ((), ())),
                                preferred_element_type=jnp.float32)      # (N, N)
            m = jnp.max(s, axis=-1, keepdims=True)
            # NOTE: on v6e/v7x `jnp.exp((s - m).astype(jnp.bfloat16))` would halve
            # the EUP / tile footprint; kept f32 so v5e does not up-convert.
            e = jnp.exp(s - m)
            l = jnp.sum(e, axis=-1, keepdims=True)
            oh = jnp.dot(e.astype(jnp.bfloat16), vh,
                         preferred_element_type=jnp.float32)             # (N, hd)
            outs.append(oh * pl.reciprocal(l, approx=True))
        og = outs[0] if hpg == 1 else jnp.concatenate(outs, axis=1)      # (N, gw)

        # LN1 statistics (full-row sum / sum-of-squares, accumulated per group)
        sum_sc[...] += jnp.sum(og, axis=1, keepdims=True)
        sq_sc[...] += jnp.sum(og * og, axis=1, keepdims=True)
        # output-projection partial sum (lane-dense full-width accumulation)
        o_ref[...] += jnp.dot(og.astype(jnp.bfloat16), wp_ref[g],
                              preferred_element_type=jnp.float32)

    # -- norm1 folded through the projection by linearity ---------------------
    #   ((A - mu)*inv) @ Wp + bp == inv*(A @ Wp) - (inv*mu)*colsum(Wp) + bp
    mu1 = sum_sc[...] * (1.0 / C)
    var1 = sq_sc[...] * (1.0 / C) - mu1 * mu1
    inv1 = lax.rsqrt(var1 + EPS)
    o_ref[...] = o_ref[...] * inv1 - (mu1 * inv1) * wpcs_ref[...] + bp_ref[...]


# --------------------------- host-side table folding -------------------------
def _fold_xpos_tables(cos, sin, scl, attn_scale):
    """Fold xpos scale, even/odd rotate selection and the attention scale into
    six position-only constant tables (all (N, C))."""
    C = cos.shape[-1]
    even = (jnp.arange(C) % 2) == 0
    cq = cos * scl * attn_scale
    aq = jnp.where(even, -sin * scl, 0.0) * attn_scale
    bq = jnp.where(even, 0.0, sin * scl) * attn_scale
    inv = 1.0 / scl
    ck = cos * inv
    ak = jnp.where(even, -sin * inv, 0.0)
    bk = jnp.where(even, 0.0, sin * inv)
    return cq, aq, bq, ck, ak, bk


# --------------------------------- wrapper -----------------------------------
def magneto_attention(x, params, cos, sin, scl, n_head):
    B, N, C = x.shape
    assert C % n_head == 0
    hd = C // n_head
    hpg = 2 if n_head % 2 == 0 else 1   # heads per group: pairs -> 128-lane slabs at hd=64
    gw = hpg * hd
    n_groups = n_head // hpg
    assert gw % 2 == 0, "rotary needs an even per-group width"
    assert cos.shape == (N, C) and sin.shape == (N, C) and scl.shape == (N, C)

    f32 = jnp.float32
    g0 = params["g0"].reshape(C).astype(f32)
    b0 = params["b0"].reshape(C).astype(f32)
    g1 = params["g1"].reshape(C).astype(f32)
    b1 = params["b1"].reshape(C).astype(f32)
    wq = params["wq"].astype(f32)
    wk = params["wk"].astype(f32)
    wv = params["wv"].astype(f32)
    wp = params["wp"].astype(f32)
    bp = params["bp"].reshape(C).astype(f32)

    # ---- fold LayerNorm affines into the adjacent projections (exact algebra) --
    wq_f, wk_f, wv_f = g0[:, None] * wq, g0[:, None] * wk, g0[:, None] * wv
    bq_b, bk_b, bv_b = b0 @ wq, b0 @ wk, b0 @ wv
    wp_f = g1[:, None] * wp
    bp_f = (b1 @ wp + bp).reshape(1, C)
    wp_colsum = jnp.sum(wp_f, axis=0, keepdims=True)                  # (1, C)

    # ---- per-head-group layouts: dynamic indexing only on the leading axis ----
    def group_cols(w):        # (C, C) -> (n_groups, C, gw)  (output features grouped)
        return w.reshape(C, n_groups, gw).transpose(1, 0, 2)

    def group_vec(b):         # (C,)   -> (n_groups, 1, gw)
        return b.reshape(n_groups, 1, gw)

    def group_rows(t):        # (N, C) -> (n_groups, N, gw)
        return t.reshape(-1, n_groups, gw).transpose(1, 0, 2)

    wqkv_g = jnp.concatenate(
        [group_cols(wq_f), group_cols(wk_f), group_cols(wv_f)],
        axis=2).astype(jnp.bfloat16)                                   # (G, C, 3*gw)
    bqkv_g = jnp.concatenate(
        [group_vec(bq_b), group_vec(bk_b), group_vec(bv_b)],
        axis=2).astype(f32)                                            # (G, 1, 3*gw)
    wp_g = wp_f.reshape(n_groups, gw, C).astype(jnp.bfloat16)          # (G, gw, C)

    attn_scale = 1.0 / math.sqrt(hd)
    tables = [group_rows(t.astype(f32)) for t in
              _fold_xpos_tables(cos.astype(f32), sin.astype(f32),
                                scl.astype(f32), attn_scale)]

    kernel = functools.partial(_magneto_kernel, n_groups=n_groups, hpg=hpg)

    def build(single_buffer_consts):
        def const_spec(shape):
            idx = lambda b: (0,) * len(shape)
            if single_buffer_consts:
                # never-changing blocks: one resident VMEM buffer instead of two
                return pl.BlockSpec(shape, idx, pipeline_mode=pl.Buffered(1))
            return pl.BlockSpec(shape, idx)

        row_spec = pl.BlockSpec((None, N, C), lambda b: (b, 0, 0))
        in_specs = [row_spec,
                    const_spec((n_groups, C, 3 * gw)),    # fused qkv weights (bf16)
                    const_spec((n_groups, 1, 3 * gw)),    # folded qkv bias rows
                    const_spec((n_groups, gw, C)),        # proj weight rows (bf16)
                    const_spec((1, C)),                   # colsum(Wp) for LN1 fold
                    const_spec((1, C))]                   # folded proj bias
        in_specs += [const_spec((n_groups, N, gw)) for _ in range(6)]  # rotary tables

        return pl.pallas_call(
            kernel,
            out_shape=jax.ShapeDtypeStruct((B, N, C), jnp.float32),
            grid_spec=pltpu.PrefetchScalarGridSpec(
                num_scalar_prefetch=0,
                grid=(B,),
                in_specs=in_specs,
                out_specs=row_spec,
                scratch_shapes=[pltpu.VMEM((N, C), jnp.bfloat16),   # normalized x
                                pltpu.VMEM((N, 1), jnp.float32),    # LN1 row sum
                                pltpu.VMEM((N, 1), jnp.float32)]),  # LN1 row sumsq
            compiler_params=pltpu.CompilerParams(
                dimension_semantics=("parallel",),
                vmem_limit_bytes=48 * 1024 * 1024),
        )

    args = (x.astype(f32), wqkv_g, bqkv_g, wp_g, wp_colsum, bp_f, *tables)
    try:
        return build(True)(*args)
    except Exception:
        # pipeline_mode / pl.Buffered not supported by this JAX -> plain specs
        return build(False)(*args)


# -------------------- XPos-2D tables (position-only glue) --------------------
def xpos_tables(head_dim, patch_shape, num_prefix, base=50000.0, scale_base=512.0):
    half_dim = head_dim // 2
    idx = jnp.arange(0, half_dim, 2, dtype=jnp.float32)
    inv_freq = 1.0 / (base ** (idx / half_dim))
    scale_vec = (idx + 0.4 * half_dim) / (1.4 * half_dim)

    H, W = patch_shape
    yv = jnp.arange(H, dtype=jnp.float32)
    xv = jnp.arange(W, dtype=jnp.float32)
    xg, yg = jnp.meshgrid(xv, yv, indexing="xy")          # (H, W), row-major tokens
    yf = jnp.einsum("i,j->ij", yg.flatten(), inv_freq)
    xf = jnp.einsum("i,j->ij", xg.flatten(), inv_freq)
    y_scales = scale_vec ** (yg.flatten() / scale_base)[:, None]
    x_scales = scale_vec ** (xg.flatten() / scale_base)[:, None]

    emb = jnp.repeat(jnp.concatenate([yf, xf], axis=-1), 2, axis=-1)       # (Np, head_dim)
    scales = jnp.repeat(jnp.concatenate([y_scales, x_scales], axis=-1), 2, axis=-1)

    cos = jnp.cos(emb)
    sin = jnp.sin(emb)
    # prepend identity rows for prefix tokens (so the kernel is uniform over N)
    cos = jnp.concatenate([jnp.ones((num_prefix, head_dim), jnp.float32), cos], axis=0)
    sin = jnp.concatenate([jnp.zeros((num_prefix, head_dim), jnp.float32), sin], axis=0)
    scales = jnp.concatenate([jnp.ones((num_prefix, head_dim), jnp.float32), scales], axis=0)
    return cos, sin, scales


# ----------------------- pure-JAX mixed-precision reference ------------------
def reference(x, params, cos, sin, scl, n_head):
    # Mirrors the torch module's math; matmul operands cast to bf16 with f32
    # accumulation to match the kernel's MXU precision choices.
    def ln(t, g, b):
        mu = t.mean(-1, keepdims=True)
        var = ((t - mu) ** 2).mean(-1, keepdims=True)
        return (t - mu) / jnp.sqrt(var + EPS) * g + b

    def mm(a, b):
        return jnp.dot(a.astype(jnp.bfloat16), b.astype(jnp.bfloat16),
                       preferred_element_type=jnp.float32)

    B, N, C = x.shape
    hd = C // n_head
    xn = ln(x, params["g0"], params["b0"])
    q = mm(xn, params["wq"])
    k = mm(xn, params["wk"])
    v = mm(xn, params["wv"])

    def rot(t):
        t1 = t[..., ::2]
        t2 = t[..., 1::2]
        return jnp.stack([-t2, t1], axis=-1).reshape(t.shape)

    q = q * cos * scl + rot(q) * sin * scl
    k = k * cos / scl + rot(k) * sin / scl

    qh = q.reshape(B, N, n_head, hd).transpose(0, 2, 1, 3).astype(jnp.bfloat16)
    kh = k.reshape(B, N, n_head, hd).transpose(0, 2, 1, 3).astype(jnp.bfloat16)
    vh = v.reshape(B, N, n_head, hd).transpose(0, 2, 1, 3).astype(jnp.bfloat16)
    s = jnp.einsum("bhqd,bhkd->bhqk", qh, kh,
                   preferred_element_type=jnp.float32) / math.sqrt(hd)
    p = jax.nn.softmax(s, axis=-1)
    o = jnp.einsum("bhqk,bhkd->bhqd", p.astype(jnp.bfloat16), vh,
                   preferred_element_type=jnp.float32)
    o = o.transpose(0, 2, 1, 3).reshape(B, N, C)
    o = ln(o, params["g1"], params["b1"])
    return mm(o, params["wp"]) + params["bp"]


# ----------------------------------- main -------------------------------------
if __name__ == "__main__":
    B, C, n_head = 2, 128, 4
    num_prefix_tokens = 2
    patch_shape = (4, 4)
    N = num_prefix_tokens + patch_shape[0] * patch_shape[1]   # 18 tokens

    key = jax.random.PRNGKey(0)
    keys = jax.random.split(key, 10)
    x = jax.random.normal(keys[0], (B, N, C), jnp.float32)

    sw = 1.0 / math.sqrt(C)
    params = dict(
        wq=jax.random.normal(keys[1], (C, C), jnp.float32) * sw,
        wk=jax.random.normal(keys[2], (C, C), jnp.float32) * sw,
        wv=jax.random.normal(keys[3], (C, C), jnp.float32) * sw,
        wp=jax.random.normal(keys[4], (C, C), jnp.float32) * sw,
        bp=jax.random.normal(keys[5], (1, C), jnp.float32) * 0.1,
        # non-trivial LayerNorm affines so the host-side folds are exercised
        g0=1.0 + 0.1 * jax.random.normal(keys[6], (1, C), jnp.float32),
        b0=0.05 * jax.random.normal(keys[7], (1, C), jnp.float32),
        g1=1.0 + 0.1 * jax.random.normal(keys[8], (1, C), jnp.float32),
        b1=0.05 * jax.random.normal(keys[9], (1, C), jnp.float32),
    )

    # XPos embedding operates on the full d_model (applied before head split),
    # matching the module's q/k shapes at the pos_emb call site.
    cos, sin, scl = xpos_tables(C, patch_shape, num_prefix_tokens)

    out = magneto_attention(x, params, cos, sin, scl, n_head)
    out = jax.block_until_ready(out)

    ref = reference(x, params, cos, sin, scl, n_head)
    max_err = float(jnp.max(jnp.abs(out - ref)))
    rel_err = float(jnp.linalg.norm(out - ref) / jnp.linalg.norm(ref))
    # bf16 matmul operands, LN-affine folds at different (but algebraically
    # equivalent) rounding points, and the EUP-approx softmax reciprocal ->
    # looser element-wise bound; relative L2 stays ~1e-2.  Real bugs give O(1).
    assert max_err < 1e-1 and rel_err < 3e-2, \
        f"max |err| = {max_err}, rel L2 = {rel_err}"
    print("KERNEL_OK")
</pallas_src>

<mosaic_0001>
module attributes {stable_mosaic.version = 11 : i64} {
  func.func @_magneto_kernel(%arg0: i32, %arg1: memref<1x18x128xf32, #tpu.memory_space<vmem>>, %arg2: memref<2x128x192xbf16, #tpu.memory_space<vmem>>, %arg3: memref<2x1x192xf32, #tpu.memory_space<vmem>>, %arg4: memref<2x64x128xbf16, #tpu.memory_space<vmem>>, %arg5: memref<1x128xf32, #tpu.memory_space<vmem>>, %arg6: memref<1x128xf32, #tpu.memory_space<vmem>>, %arg7: memref<2x18x64xf32, #tpu.memory_space<vmem>>, %arg8: memref<2x18x64xf32, #tpu.memory_space<vmem>>, %arg9: memref<2x18x64xf32, #tpu.memory_space<vmem>>, %arg10: memref<2x18x64xf32, #tpu.memory_space<vmem>>, %arg11: memref<2x18x64xf32, #tpu.memory_space<vmem>>, %arg12: memref<2x18x64xf32, #tpu.memory_space<vmem>>, %arg13: memref<1x18x128xf32, #tpu.memory_space<vmem>>, %arg14: memref<18x128xbf16, #tpu.memory_space<vmem>>, %arg15: memref<18x1xf32, #tpu.memory_space<vmem>>, %arg16: memref<18x1xf32, #tpu.memory_space<vmem>>) attributes {dimension_semantics = [#tpu.dimension_semantics<parallel>], iteration_bounds = array<i64: 2>, scalar_prefetch = 0 : i64, scratch_operands = 3 : i64, tpu.core_type = #tpu.core_type<tc>, window_params = [{transform_indices = @transform_0, window_bounds = array<i64: 1, 18, 128>}, {pipeline_mode = #tpu.pipeline_mode<synchronous>, transform_indices = @transform_1, window_bounds = array<i64: 2, 128, 192>}, {pipeline_mode = #tpu.pipeline_mode<synchronous>, transform_indices = @transform_2, window_bounds = array<i64: 2, 1, 192>}, {pipeline_mode = #tpu.pipeline_mode<synchronous>, transform_indices = @transform_3, window_bounds = array<i64: 2, 64, 128>}, {pipeline_mode = #tpu.pipeline_mode<synchronous>, transform_indices = @transform_4, window_bounds = array<i64: 1, 128>}, {pipeline_mode = #tpu.pipeline_mode<synchronous>, transform_indices = @transform_5, window_bounds = array<i64: 1, 128>}, {pipeline_mode = #tpu.pipeline_mode<synchronous>, transform_indices = @transform_6, window_bounds = array<i64: 2, 18, 64>}, {pipeline_mode = #tpu.pipeline_mode<synchronous>, transform_indices = @transform_7, window_bounds = array<i64: 2, 18, 64>}, {pipeline_mode = #tpu.pipeline_mode<synchronous>, transform_indices = @transform_8, window_bounds = array<i64: 2, 18, 64>}, {pipeline_mode = #tpu.pipeline_mode<synchronous>, transform_indices = @transform_9, window_bounds = array<i64: 2, 18, 64>}, {pipeline_mode = #tpu.pipeline_mode<synchronous>, transform_indices = @transform_10, window_bounds = array<i64: 2, 18, 64>}, {pipeline_mode = #tpu.pipeline_mode<synchronous>, transform_indices = @transform_11, window_bounds = array<i64: 2, 18, 64>}, {transform_indices = @transform_12, window_bounds = array<i64: 1, 18, 128>}]} {
    %c0 = arith.constant 0 : index
    %c0_0 = arith.constant 0 : index
    %c0_1 = arith.constant 0 : index
    %0 = vector.load %arg1[%c0, %c0_0, %c0_1] : memref<1x18x128xf32, #tpu.memory_space<vmem>>, vector<1x18x128xf32>
    %1 = vector.shape_cast %0 : vector<1x18x128xf32> to vector<18x128xf32>
    %cst = arith.constant dense<0.000000e+00> : vector<18xf32>
    %2 = vector.multi_reduction <add>, %1, %cst [1] : vector<18x128xf32> to vector<18xf32>
    %3 = vector.shape_cast %2 : vector<18xf32> to vector<18x1xf32>
    %cst_2 = arith.constant 1.280000e+02 : f32
    %4 = vector.broadcast %cst_2 : f32 to vector<18x1xf32>
    %5 = arith.divf %3, %4 : vector<18x1xf32>
    %6 = vector.broadcast %5 : vector<18x1xf32> to vector<18x128xf32>
    %7 = arith.subf %1, %6 : vector<18x128xf32>
    %8 = arith.mulf %7, %7 : vector<18x128xf32>
    %cst_3 = arith.constant dense<0.000000e+00> : vector<18xf32>
    %9 = vector.multi_reduction <add>, %8, %cst_3 [1] : vector<18x128xf32> to vector<18xf32>
    %10 = vector.shape_cast %9 : vector<18xf32> to vector<18x1xf32>
    %cst_4 = arith.constant 1.280000e+02 : f32
    %11 = vector.broadcast %cst_4 : f32 to vector<18x1xf32>
    %12 = arith.divf %10, %11 : vector<18x1xf32>
    %13 = vector.broadcast %5 : vector<18x1xf32> to vector<18x128xf32>
    %14 = arith.subf %1, %13 : vector<18x128xf32>
    %cst_5 = arith.constant 9.99999974E-6 : f32
    %15 = vector.broadcast %cst_5 : f32 to vector<18x1xf32>
    %16 = arith.addf %12, %15 : vector<18x1xf32>
    %17 = math.rsqrt %16 : vector<18x1xf32>
    %18 = vector.broadcast %17 : vector<18x1xf32> to vector<18x128xf32>
    %19 = arith.mulf %14, %18 : vector<18x128xf32>
    %20 = arith.truncf %19 : vector<18x128xf32> to vector<18x128xbf16>
    %c0_6 = arith.constant 0 : index
    %c0_7 = arith.constant 0 : index
    %21 = vector.load %arg14[%c0_6, %c0_7] : memref<18x128xbf16, #tpu.memory_space<vmem>>, vector<18x128xbf16>
    tpu.vector_store %arg14[%c0_6, %c0_7], %20 {strides = array<i32>} : memref<18x128xbf16, #tpu.memory_space<vmem>>, vector<18x128xbf16>,
    %cst_8 = arith.constant 0.000000e+00 : f32
    %22 = vector.broadcast %cst_8 : f32 to vector<18x128xf32>
    %c0_9 = arith.constant 0 : index
    %c0_10 = arith.constant 0 : index
    %c0_11 = arith.constant 0 : index
    %23 = vector.load %arg13[%c0_9, %c0_10, %c0_11] : memref<1x18x128xf32, #tpu.memory_space<vmem>>, vector<1x18x128xf32>
    %24 = vector.shape_cast %23 : vector<1x18x128xf32> to vector<18x128xf32>
    %25 = vector.shape_cast %22 : vector<18x128xf32> to vector<1x18x128xf32>
    tpu.vector_store %arg13[%c0_9, %c0_10, %c0_11], %25 {strides = array<i32>} : memref<1x18x128xf32, #tpu.memory_space<vmem>>, vector<1x18x128xf32>,
    %cst_12 = arith.constant 0.000000e+00 : f32
    %26 = vector.broadcast %cst_12 : f32 to vector<18x1xf32>
    %c0_13 = arith.constant 0 : index
    %c0_14 = arith.constant 0 : index
    %27 = vector.load %arg15[%c0_13, %c0_14] : memref<18x1xf32, #tpu.memory_space<vmem>>, vector<18x1xf32>
    tpu.vector_store %arg15[%c0_13, %c0_14], %26 {strides = array<i32>} : memref<18x1xf32, #tpu.memory_space<vmem>>, vector<18x1xf32>,
    %cst_15 = arith.constant 0.000000e+00 : f32
    %28 = vector.broadcast %cst_15 : f32 to vector<18x1xf32>
    %c0_16 = arith.constant 0 : index
    %c0_17 = arith.constant 0 : index
    %29 = vector.load %arg16[%c0_16, %c0_17] : memref<18x1xf32, #tpu.memory_space<vmem>>, vector<18x1xf32>
    tpu.vector_store %arg16[%c0_16, %c0_17], %28 {strides = array<i32>} : memref<18x1xf32, #tpu.memory_space<vmem>>, vector<18x1xf32>,
    %c0_i32 = arith.constant 0 : i32
    %c2_i32 = arith.constant 2 : i32
    %30 = arith.addi %c0_i32, %c2_i32 : i32
    %c1_i32 = arith.constant 1 : i32
    scf.for %arg17 = %c0_i32 to %30 step %c1_i32  : i32 {
      %c1_i32_36 = arith.constant 1 : i32
      %58 = arith.muli %arg17, %c1_i32_36 : i32
      %c0_i32_37 = arith.constant 0 : i32
      %59 = arith.addi %c0_i32_37, %58 : i32
      %c0_38 = arith.constant 0 : index
      %c0_39 = arith.constant 0 : index
      %60 = vector.load %arg14[%c0_38, %c0_39] : memref<18x128xbf16, #tpu.memory_space<vmem>>, vector<18x128xbf16>
      %61 = arith.index_cast %59 : i32 to index
      %c0_40 = arith.constant 0 : index
      %c0_41 = arith.constant 0 : index
      %62 = vector.load %arg2[%61, %c0_40, %c0_41] : memref<2x128x192xbf16, #tpu.memory_space<vmem>>, vector<1x128x192xbf16>
      %63 = vector.shape_cast %62 : vector<1x128x192xbf16> to vector<128x192xbf16>
      %cst_42 = arith.constant dense<0.000000e+00> : vector<18x192xf32>
      %64 = tpu.matmul %60, %63, %cst_42 {dimension_numbers = #tpu.dot_dimension_numbers<[1], [0], [0], [1], [0, 0, 1, 1], [], []>} : vector<18x128xbf16>, vector<128x192xbf16>, vector<18x192xf32> -> vector<18x192xf32>
      %65 = arith.index_cast %59 : i32 to index
      %c0_43 = arith.constant 0 : index
      %c0_44 = arith.constant 0 : index
      %66 = vector.load %arg3[%65, %c0_43, %c0_44] : memref<2x1x192xf32, #tpu.memory_space<vmem>>, vector<1x1x192xf32>
      %67 = vector.shape_cast %66 : vector<1x1x192xf32> to vector<1x192xf32>
      %68 = vector.broadcast %67 : vector<1x192xf32> to vector<18x192xf32>
      %69 = arith.addf %64, %68 : vector<18x192xf32>
      %70 = vector.extract_strided_slice %69 {offsets = [0, 0], sizes = [18, 64], strides = [1, 1]} : vector<18x192xf32> to vector<18x64xf32>
      %71 = vector.extract_strided_slice %69 {offsets = [0, 64], sizes = [18, 64], strides = [1, 1]} : vector<18x192xf32> to vector<18x64xf32>
      %72 = vector.extract_strided_slice %69 {offsets = [0, 128], sizes = [18, 64], strides = [1, 1]} : vector<18x192xf32> to vector<18x64xf32>
      %73 = arith.index_cast %59 : i32 to index
      %c0_45 = arith.constant 0 : index
      %c0_46 = arith.constant 0 : index
      %74 = vector.load %arg7[%73, %c0_45, %c0_46] : memref<2x18x64xf32, #tpu.memory_space<vmem>>, vector<1x18x64xf32>
      %75 = vector.shape_cast %74 : vector<1x18x64xf32> to vector<18x64xf32>
      %76 = arith.mulf %70, %75 : vector<18x64xf32>
      %c63_i32 = arith.constant 63 : i32
      %77 = tpu.dynamic_rotate %70 by %c63_i32 dim 1 : vector<18x64xf32>, i32 -> vector<18x64xf32>
      %78 = arith.index_cast %59 : i32 to index
      %c0_47 = arith.constant 0 : index
      %c0_48 = arith.constant 0 : index
      %79 = vector.load %arg8[%78, %c0_47, %c0_48] : memref<2x18x64xf32, #tpu.memory_space<vmem>>, vector<1x18x64xf32>
      %80 = vector.shape_cast %79 : vector<1x18x64xf32> to vector<18x64xf32>
      %81 = arith.mulf %77, %80 : vector<18x64xf32>
      %82 = arith.addf %76, %81 : vector<18x64xf32>
      %c1_i32_49 = arith.constant 1 : i32
      %83 = tpu.dynamic_rotate %70 by %c1_i32_49 dim 1 : vector<18x64xf32>, i32 -> vector<18x64xf32>
      %84 = arith.index_cast %59 : i32 to index
      %c0_50 = arith.constant 0 : index
      %c0_51 = arith.constant 0 : index
      %85 = vector.load %arg9[%84, %c0_50, %c0_51] : memref<2x18x64xf32, #tpu.memory_space<vmem>>, vector<1x18x64xf32>
      %86 = vector.shape_cast %85 : vector<1x18x64xf32> to vector<18x64xf32>
      %87 = arith.mulf %83, %86 : vector<18x64xf32>
      %88 = arith.addf %82, %87 : vector<18x64xf32>
      %89 = arith.index_cast %59 : i32 to index
      %c0_52 = arith.constant 0 : index
      %c0_53 = arith.constant 0 : index
      %90 = vector.load %arg10[%89, %c0_52, %c0_53] : memref<2x18x64xf32, #tpu.memory_space<vmem>>, vector<1x18x64xf32>
      %91 = vector.shape_cast %90 : vector<1x18x64xf32> to vector<18x64xf32>
      %92 = arith.mulf %71, %91 : vector<18x64xf32>
      %c63_i32_54 = arith.constant 63 : i32
      %93 = tpu.dynamic_rotate %71 by %c63_i32_54 dim 1 : vector<18x64xf32>, i32 -> vector<18x64xf32>
      %94 = arith.index_cast %59 : i32 to index
      %c0_55 = arith.constant 0 : index
      %c0_56 = arith.constant 0 : index
      %95 = vector.load %arg11[%94, %c0_55, %c0_56] : memref<2x18x64xf32, #tpu.memory_space<vmem>>, vector<1x18x64xf32>
      %96 = vector.shape_cast %95 : vector<1x18x64xf32> to vector<18x64xf32>
      %97 = arith.mulf %93, %96 : vector<18x64xf32>
      %98 = arith.addf %92, %97 : vector<18x64xf32>
      %c1_i32_57 = arith.constant 1 : i32
      %99 = tpu.dynamic_rotate %71 by %c1_i32_57 dim 1 : vector<18x64xf32>, i32 -> vector<18x64xf32>
      %100 = arith.index_cast %59 : i32 to index
      %c0_58 = arith.constant 0 : index
      %c0_59 = arith.constant 0 : index
      %101 = vector.load %arg12[%100, %c0_58, %c0_59] : memref<2x18x64xf32, #tpu.memory_space<vmem>>, vector<1x18x64xf32>
      %102 = vector.shape_cast %101 : vector<1x18x64xf32> to vector<18x64xf32>
      %103 = arith.mulf %99, %102 : vector<18x64xf32>
      %104 = arith.addf %98, %103 : vector<18x64xf32>
      %105 = arith.truncf %88 : vector<18x64xf32> to vector<18x64xbf16>
      %106 = arith.truncf %104 : vector<18x64xf32> to vector<18x64xbf16>
      %107 = arith.truncf %72 : vector<18x64xf32> to vector<18x64xbf16>
      %108 = vector.extract_strided_slice %105 {offsets = [0, 0], sizes = [18, 32], strides = [1, 1]} : vector<18x64xbf16> to vector<18x32xbf16>
      %109 = vector.extract_strided_slice %106 {offsets = [0, 0], sizes = [18, 32], strides = [1, 1]} : vector<18x64xbf16> to vector<18x32xbf16>
      %110 = vector.extract_strided_slice %107 {offsets = [0, 0], sizes = [18, 32], strides = [1, 1]} : vector<18x64xbf16> to vector<18x32xbf16>
      %cst_60 = arith.constant dense<0.000000e+00> : vector<18x18xf32>
      %111 = tpu.matmul %108, %109, %cst_60 {dimension_numbers = #tpu.dot_dimension_numbers<[1], [1], [0], [0], [0, 0, 1, 0], [], []>} : vector<18x32xbf16>, vector<18x32xbf16>, vector<18x18xf32> -> vector<18x18xf32>
      %cst_61 = arith.constant dense<0xFF800000> : vector<18xf32>
      %112 = vector.multi_reduction <maximumf>, %111, %cst_61 [1] : vector<18x18xf32> to vector<18xf32>
      %113 = vector.shape_cast %112 : vector<18xf32> to vector<18x1xf32>
      %114 = vector.broadcast %113 : vector<18x1xf32> to vector<18x18xf32>
      %115 = arith.subf %111, %114 : vector<18x18xf32>
      %116 = math.exp %115 : vector<18x18xf32>
      %cst_62 = arith.constant dense<0.000000e+00> : vector<18xf32>
      %117 = vector.multi_reduction <add>, %116, %cst_62 [1] : vector<18x18xf32> to vector<18xf32>
      %118 = vector.shape_cast %117 : vector<18xf32> to vector<18x1xf32>
      %119 = arith.truncf %116 : vector<18x18xf32> to vector<18x18xbf16>
      %cst_63 = arith.constant dense<0.000000e+00> : vector<18x32xf32>
      %120 = tpu.matmul %119, %110, %cst_63 {dimension_numbers = #tpu.dot_dimension_numbers<[1], [0], [0], [1], [0, 0, 1, 1], [], []>} : vector<18x18xbf16>, vector<18x32xbf16>, vector<18x32xf32> -> vector<18x32xf32>
      %121 = tpu.reciprocal %118 {approx = true} : vector<18x1xf32> -> vector<18x1xf32>
      %122 = vector.broadcast %121 : vector<18x1xf32> to vector<18x32xf32>
      %123 = arith.mulf %120, %122 : vector<18x32xf32>
      %124 = vector.extract_strided_slice %105 {offsets = [0, 32], sizes = [18, 32], strides = [1, 1]} : vector<18x64xbf16> to vector<18x32xbf16>
      %125 = vector.extract_strided_slice %106 {offsets = [0, 32], sizes = [18, 32], strides = [1, 1]} : vector<18x64xbf16> to vector<18x32xbf16>
      %126 = vector.extract_strided_slice %107 {offsets = [0, 32], sizes = [18, 32], strides = [1, 1]} : vector<18x64xbf16> to vector<18x32xbf16>
      %cst_64 = arith.constant dense<0.000000e+00> : vector<18x18xf32>
      %127 = tpu.matmul %124, %125, %cst_64 {dimension_numbers = #tpu.dot_dimension_numbers<[1], [1], [0], [0], [0, 0, 1, 0], [], []>} : vector<18x32xbf16>, vector<18x32xbf16>, vector<18x18xf32> -> vector<18x18xf32>
      %cst_65 = arith.constant dense<0xFF800000> : vector<18xf32>
      %128 = vector.multi_reduction <maximumf>, %127, %cst_65 [1] : vector<18x18xf32> to vector<18xf32>
      %129 = vector.shape_cast %128 : vector<18xf32> to vector<18x1xf32>
      %130 = vector.broadcast %129 : vector<18x1xf32> to vector<18x18xf32>
      %131 = arith.subf %127, %130 : vector<18x18xf32>
      %132 = math.exp %131 : vector<18x18xf32>
      %cst_66 = arith.constant dense<0.000000e+00> : vector<18xf32>
      %133 = vector.multi_reduction <add>, %132, %cst_66 [1] : vector<18x18xf32> to vector<18xf32>
      %134 = vector.shape_cast %133 : vector<18xf32> to vector<18x1xf32>
      %135 = arith.truncf %132 : vector<18x18xf32> to vector<18x18xbf16>
      %cst_67 = arith.constant dense<0.000000e+00> : vector<18x32xf32>
      %136 = tpu.matmul %135, %126, %cst_67 {dimension_numbers = #tpu.dot_dimension_numbers<[1], [0], [0], [1], [0, 0, 1, 1], [], []>} : vector<18x18xbf16>, vector<18x32xbf16>, vector<18x32xf32> -> vector<18x32xf32>
      %137 = tpu.reciprocal %134 {approx = true} : vector<18x1xf32> -> vector<18x1xf32>
      %138 = vector.broadcast %137 : vector<18x1xf32> to vector<18x32xf32>
      %139 = arith.mulf %136, %138 : vector<18x32xf32>
      %140 = tpu.concatenate %123, %139 in 1 : vector<18x32xf32>, vector<18x32xf32> -> vector<18x64xf32>
      %c0_68 = arith.constant 0 : index
      %c0_69 = arith.constant 0 : index
      %141 = vector.load %arg15[%c0_68, %c0_69] : memref<18x1xf32, #tpu.memory_space<vmem>>, vector<18x1xf32>
      %cst_70 = arith.constant dense<0.000000e+00> : vector<18xf32>
      %142 = vector.multi_reduction <add>, %140, %cst_70 [1] : vector<18x64xf32> to vector<18xf32>
      %143 = vector.shape_cast %142 : vector<18xf32> to vector<18x1xf32>
      %144 = arith.addf %141, %143 : vector<18x1xf32>
      %c0_71 = arith.constant 0 : index
      %c0_72 = arith.constant 0 : index
      %145 = vector.load %arg15[%c0_71, %c0_72] : memref<18x1xf32, #tpu.memory_space<vmem>>, vector<18x1xf32>
      tpu.vector_store %arg15[%c0_71, %c0_72], %144 {strides = array<i32>} : memref<18x1xf32, #tpu.memory_space<vmem>>, vector<18x1xf32>,
      %c0_73 = arith.constant 0 : index
      %c0_74 = arith.constant 0 : index
      %146 = vector.load %arg16[%c0_73, %c0_74] : memref<18x1xf32, #tpu.memory_space<vmem>>, vector<18x1xf32>
      %147 = arith.mulf %140, %140 : vector<18x64xf32>
      %cst_75 = arith.constant dense<0.000000e+00> : vector<18xf32>
      %148 = vector.multi_reduction <add>, %147, %cst_75 [1] : vector<18x64xf32> to vector<18xf32>
      %149 = vector.shape_cast %148 : vector<18xf32> to vector<18x1xf32>
      %150 = arith.addf %146, %149 : vector<18x1xf32>
      %c0_76 = arith.constant 0 : index
      %c0_77 = arith.constant 0 : index
      %151 = vector.load %arg16[%c0_76, %c0_77] : memref<18x1xf32, #tpu.memory_space<vmem>>, vector<18x1xf32>
      tpu.vector_store %arg16[%c0_76, %c0_77], %150 {strides = array<i32>} : memref<18x1xf32, #tpu.memory_space<vmem>>, vector<18x1xf32>,
      %c0_78 = arith.constant 0 : index
      %c0_79 = arith.constant 0 : index
      %c0_80 = arith.constant 0 : index
      %152 = vector.load %arg13[%c0_78, %c0_79, %c0_80] : memref<1x18x128xf32, #tpu.memory_space<vmem>>, vector<1x18x128xf32>
      %153 = vector.shape_cast %152 : vector<1x18x128xf32> to vector<18x128xf32>
      %154 = arith.truncf %140 : vector<18x64xf32> to vector<18x64xbf16>
      %155 = arith.index_cast %59 : i32 to index
      %c0_81 = arith.constant 0 : index
      %c0_82 = arith.constant 0 : index
      %156 = vector.load %arg4[%155, %c0_81, %c0_82] : memref<2x64x128xbf16, #tpu.memory_space<vmem>>, vector<1x64x128xbf16>
      %157 = vector.shape_cast %156 : vector<1x64x128xbf16> to vector<64x128xbf16>
      %cst_83 = arith.constant dense<0.000000e+00> : vector<18x128xf32>
      %158 = tpu.matmul %154, %157, %cst_83 {dimension_numbers = #tpu.dot_dimension_numbers<[1], [0], [0], [1], [0, 0, 1, 1], [], []>} : vector<18x64xbf16>, vector<64x128xbf16>, vector<18x128xf32> -> vector<18x128xf32>
      %159 = arith.addf %153, %158 : vector<18x128xf32>
      %c0_84 = arith.constant 0 : index
      %c0_85 = arith.constant 0 : index
      %c0_86 = arith.constant 0 : index
      %160 = vector.load %arg13[%c0_84, %c0_85, %c0_86] : memref<1x18x128xf32, #tpu.memory_space<vmem>>, vector<1x18x128xf32>
      %161 = vector.shape_cast %160 : vector<1x18x128xf32> to vector<18x128xf32>
      %162 = vector.shape_cast %159 : vector<18x128xf32> to vector<1x18x128xf32>
      tpu.vector_store %arg13[%c0_84, %c0_85, %c0_86], %162 {strides = array<i32>} : memref<1x18x128xf32, #tpu.memory_space<vmem>>, vector<1x18x128xf32>,
    }
    %c2_i32_18 = arith.constant 2 : i32
    %c0_19 = arith.constant 0 : index
    %c0_20 = arith.constant 0 : index
    %31 = vector.load %arg15[%c0_19, %c0_20] : memref<18x1xf32, #tpu.memory_space<vmem>>, vector<18x1xf32>
    %cst_21 = arith.constant 7.812500e-03 : f32
    %32 = vector.broadcast %cst_21 : f32 to vector<18x1xf32>
    %33 = arith.mulf %31, %32 : vector<18x1xf32>
    %c0_22 = arith.constant 0 : index
    %c0_23 = arith.constant 0 : index
    %34 = vector.load %arg16[%c0_22, %c0_23] : memref<18x1xf32, #tpu.memory_space<vmem>>, vector<18x1xf32>
    %cst_24 = arith.constant 7.812500e-03 : f32
    %35 = vector.broadcast %cst_24 : f32 to vector<18x1xf32>
    %36 = arith.mulf %34, %35 : vector<18x1xf32>
    %37 = arith.mulf %33, %33 : vector<18x1xf32>
    %38 = arith.subf %36, %37 : vector<18x1xf32>
    %cst_25 = arith.constant 9.99999974E-6 : f32
    %39 = vector.broadcast %cst_25 : f32 to vector<18x1xf32>
    %40 = arith.addf %38, %39 : vector<18x1xf32>
    %41 = math.rsqrt %40 : vector<18x1xf32>
    %c0_26 = arith.constant 0 : index
    %c0_27 = arith.constant 0 : index
    %c0_28 = arith.constant 0 : index
    %42 = vector.load %arg13[%c0_26, %c0_27, %c0_28] : memref<1x18x128xf32, #tpu.memory_space<vmem>>, vector<1x18x128xf32>
    %43 = vector.shape_cast %42 : vector<1x18x128xf32> to vector<18x128xf32>
    %44 = vector.broadcast %41 : vector<18x1xf32> to vector<18x128xf32>
    %45 = arith.mulf %43, %44 : vector<18x128xf32>
    %46 = arith.mulf %33, %41 : vector<18x1xf32>
    %c0_29 = arith.constant 0 : index
    %c0_30 = arith.constant 0 : index
    %47 = vector.load %arg5[%c0_29, %c0_30] : memref<1x128xf32, #tpu.memory_space<vmem>>, vector<1x128xf32>
    %48 = vector.broadcast %46 : vector<18x1xf32> to vector<18x128xf32>
    %49 = vector.broadcast %47 : vector<1x128xf32> to vector<18x128xf32>
    %50 = arith.mulf %48, %49 : vector<18x128xf32>
    %51 = arith.subf %45, %50 : vector<18x128xf32>
    %c0_31 = arith.constant 0 : index
    %c0_32 = arith.constant 0 : index
    %52 = vector.load %arg6[%c0_31, %c0_32] : memref<1x128xf32, #tpu.memory_space<vmem>>, vector<1x128xf32>
    %53 = vector.broadcast %52 : vector<1x128xf32> to vector<18x128xf32>
    %54 = arith.addf %51, %53 : vector<18x128xf32>
    %c0_33 = arith.constant 0 : index
    %c0_34 = arith.constant 0 : index
    %c0_35 = arith.constant 0 : index
    %55 = vector.load %arg13[%c0_33, %c0_34, %c0_35] : memref<1x18x128xf32, #tpu.memory_space<vmem>>, vector<1x18x128xf32>
    %56 = vector.shape_cast %55 : vector<1x18x128xf32> to vector<18x128xf32>
    %57 = vector.shape_cast %54 : vector<18x128xf32> to vector<1x18x128xf32>
    tpu.vector_store %arg13[%c0_33, %c0_34, %c0_35], %57 {strides = array<i32>} : memref<1x18x128xf32, #tpu.memory_space<vmem>>, vector<1x18x128xf32>,
    return
  }
  func.func @transform_0(%arg0: i32) -> (i32, i32, i32) {
    %c0_i32 = arith.constant 0 : i32
    %c0_i32_0 = arith.constant 0 : i32
    %c0_i32_1 = arith.constant 0 : i32
    return %arg0, %c0_i32, %c0_i32_0 : i32, i32, i32
  }
  func.func @transform_1(%arg0: i32) -> (i32, i32, i32) {
    %c0_i32 = arith.constant 0 : i32
    %c0_i32_0 = arith.constant 0 : i32
    %c0_i32_1 = arith.constant 0 : i32
    %c0_i32_2 = arith.constant 0 : i32
    return %c0_i32, %c0_i32_0, %c0_i32_1 : i32, i32, i32
  }
  func.func @transform_2(%arg0: i32) -> (i32, i32, i32) {
    %c0_i32 = arith.constant 0 : i32
    %c0_i32_0 = arith.constant 0 : i32
    %c0_i32_1 = arith.constant 0 : i32
    %c0_i32_2 = arith.constant 0 : i32
    return %c0_i32, %c0_i32_0, %c0_i32_1 : i32, i32, i32
  }
  func.func @transform_3(%arg0: i32) -> (i32, i32, i32) {
    %c0_i32 = arith.constant 0 : i32
    %c0_i32_0 = arith.constant 0 : i32
    %c0_i32_1 = arith.constant 0 : i32
    %c0_i32_2 = arith.constant 0 : i32
    return %c0_i32, %c0_i32_0, %c0_i32_1 : i32, i32, i32
  }
  func.func @transform_4(%arg0: i32) -> (i32, i32) {
    %c0_i32 = arith.constant 0 : i32
    %c0_i32_0 = arith.constant 0 : i32
    %c0_i32_1 = arith.constant 0 : i32
    return %c0_i32, %c0_i32_0 : i32, i32
  }
  func.func @transform_5(%arg0: i32) -> (i32, i32) {
    %c0_i32 = arith.constant 0 : i32
    %c0_i32_0 = arith.constant 0 : i32
    %c0_i32_1 = arith.constant 0 : i32
    return %c0_i32, %c0_i32_0 : i32, i32
  }
  func.func @transform_6(%arg0: i32) -> (i32, i32, i32) {
    %c0_i32 = arith.constant 0 : i32
    %c0_i32_0 = arith.constant 0 : i32
    %c0_i32_1 = arith.constant 0 : i32
    %c0_i32_2 = arith.constant 0 : i32
    return %c0_i32, %c0_i32_0, %c0_i32_1 : i32, i32, i32
  }
  func.func @transform_7(%arg0: i32) -> (i32, i32, i32) {
    %c0_i32 = arith.constant 0 : i32
    %c0_i32_0 = arith.constant 0 : i32
    %c0_i32_1 = arith.constant 0 : i32
    %c0_i32_2 = arith.constant 0 : i32
    return %c0_i32, %c0_i32_0, %c0_i32_1 : i32, i32, i32
  }
  func.func @transform_8(%arg0: i32) -> (i32, i32, i32) {
    %c0_i32 = arith.constant 0 : i32
    %c0_i32_0 = arith.constant 0 : i32
    %c0_i32_1 = arith.constant 0 : i32
    %c0_i32_2 = arith.constant 0 : i32
    return %c0_i32, %c0_i32_0, %c0_i32_1 : i32, i32, i32
  }
  func.func @transform_9(%arg0: i32) -> (i32, i32, i32) {
    %c0_i32 = arith.constant 0 : i32
    %c0_i32_0 = arith.constant 0 : i32
    %c0_i32_1 = arith.constant 0 : i32
    %c0_i32_2 = arith.constant 0 : i32
    return %c0_i32, %c0_i32_0, %c0_i32_1 : i32, i32, i32
  }
  func.func @transform_10(%arg0: i32) -> (i32, i32, i32) {
    %c0_i32 = arith.constant 0 : i32
    %c0_i32_0 = arith.constant 0 : i32
    %c0_i32_1 = arith.constant 0 : i32
    %c0_i32_2 = arith.constant 0 : i32
    return %c0_i32, %c0_i32_0, %c0_i32_1 : i32, i32, i32
  }
  func.func @transform_11(%arg0: i32) -> (i32, i32, i32) {
    %c0_i32 = arith.constant 0 : i32
    %c0_i32_0 = arith.constant 0 : i32
    %c0_i32_1 = arith.constant 0 : i32
    %c0_i32_2 = arith.constant 0 : i32
    return %c0_i32, %c0_i32_0, %c0_i32_1 : i32, i32, i32
  }
  func.func @transform_12(%arg0: i32) -> (i32, i32, i32) {
    %c0_i32 = arith.constant 0 : i32
    %c0_i32_0 = arith.constant 0 : i32
    %c0_i32_1 = arith.constant 0 : i32
    return %arg0, %c0_i32, %c0_i32_0 : i32, i32, i32
  }
}

module attributes {stable_mosaic.version = 11 : i64} {
  func.func @_magneto_kernel(%arg0: i32, %arg1: memref<1x18x128xf32, #tpu.memory_space<vmem>>, %arg2: memref<2x128x192xbf16, #tpu.memory_space<vmem>>, %arg3: memref<2x1x192xf32, #tpu.memory_space<vmem>>, %arg4: memref<2x64x128xbf16, #tpu.memory_space<vmem>>, %arg5: memref<1x128xf32, #tpu.memory_space<vmem>>, %arg6: memref<1x128xf32, #tpu.memory_space<vmem>>, %arg7: memref<2x18x64xf32, #tpu.memory_space<vmem>>, %arg8: memref<2x18x64xf32, #tpu.memory_space<vmem>>, %arg9: memref<2x18x64xf32, #tpu.memory_space<vmem>>, %arg10: memref<2x18x64xf32, #tpu.memory_space<vmem>>, %arg11: memref<2x18x64xf32, #tpu.memory_space<vmem>>, %arg12: memref<2x18x64xf32, #tpu.memory_space<vmem>>, %arg13: memref<1x18x128xf32, #tpu.memory_space<vmem>>, %arg14: memref<18x128xbf16, #tpu.memory_space<vmem>>, %arg15: memref<18x1xf32, #tpu.memory_space<vmem>>, %arg16: memref<18x1xf32, #tpu.memory_space<vmem>>) attributes {dimension_semantics = [#tpu.dimension_semantics<parallel>], iteration_bounds = array<i64: 2>, scalar_prefetch = 0 : i64, scratch_operands = 3 : i64, tpu.core_type = #tpu.core_type<tc>, window_params = [{transform_indices = @transform_0, window_bounds = array<i64: 1, 18, 128>}, {pipeline_mode = #tpu.pipeline_mode<synchronous>, transform_indices = @transform_1, window_bounds = array<i64: 2, 128, 192>}, {pipeline_mode = #tpu.pipeline_mode<synchronous>, transform_indices = @transform_2, window_bounds = array<i64: 2, 1, 192>}, {pipeline_mode = #tpu.pipeline_mode<synchronous>, transform_indices = @transform_3, window_bounds = array<i64: 2, 64, 128>}, {pipeline_mode = #tpu.pipeline_mode<synchronous>, transform_indices = @transform_4, window_bounds = array<i64: 1, 128>}, {pipeline_mode = #tpu.pipeline_mode<synchronous>, transform_indices = @transform_5, window_bounds = array<i64: 1, 128>}, {pipeline_mode = #tpu.pipeline_mode<synchronous>, transform_indices = @transform_6, window_bounds = array<i64: 2, 18, 64>}, {pipeline_mode = #tpu.pipeline_mode<synchronous>, transform_indices = @transform_7, window_bounds = array<i64: 2, 18, 64>}, {pipeline_mode = #tpu.pipeline_mode<synchronous>, transform_indices = @transform_8, window_bounds = array<i64: 2, 18, 64>}, {pipeline_mode = #tpu.pipeline_mode<synchronous>, transform_indices = @transform_9, window_bounds = array<i64: 2, 18, 64>}, {pipeline_mode = #tpu.pipeline_mode<synchronous>, transform_indices = @transform_10, window_bounds = array<i64: 2, 18, 64>}, {pipeline_mode = #tpu.pipeline_mode<synchronous>, transform_indices = @transform_11, window_bounds = array<i64: 2, 18, 64>}, {transform_indices = @transform_12, window_bounds = array<i64: 1, 18, 128>}]} {
    %c0 = arith.constant 0 : index
    %c0_0 = arith.constant 0 : index
    %c0_1 = arith.constant 0 : index
    %0 = vector.load %arg1[%c0, %c0_0, %c0_1] : memref<1x18x128xf32, #tpu.memory_space<vmem>>, vector<1x18x128xf32>
    %1 = vector.shape_cast %0 : vector<1x18x128xf32> to vector<18x128xf32>
    %cst = arith.constant dense<0.000000e+00> : vector<18xf32>
    %2 = vector.multi_reduction <add>, %1, %cst [1] : vector<18x128xf32> to vector<18xf32>
    %3 = vector.shape_cast %2 : vector<18xf32> to vector<18x1xf32>
    %cst_2 = arith.constant 1.280000e+02 : f32
    %4 = vector.broadcast %cst_2 : f32 to vector<18x1xf32>
    %5 = arith.divf %3, %4 : vector<18x1xf32>
    %6 = vector.broadcast %5 : vector<18x1xf32> to vector<18x128xf32>
    %7 = arith.subf %1, %6 : vector<18x128xf32>
    %8 = arith.mulf %7, %7 : vector<18x128xf32>
    %cst_3 = arith.constant dense<0.000000e+00> : vector<18xf32>
    %9 = vector.multi_reduction <add>, %8, %cst_3 [1] : vector<18x128xf32> to vector<18xf32>
    %10 = vector.shape_cast %9 : vector<18xf32> to vector<18x1xf32>
    %cst_4 = arith.constant 1.280000e+02 : f32
    %11 = vector.broadcast %cst_4 : f32 to vector<18x1xf32>
    %12 = arith.divf %10, %11 : vector<18x1xf32>
    %13 = vector.broadcast %5 : vector<18x1xf32> to vector<18x128xf32>
    %14 = arith.subf %1, %13 : vector<18x128xf32>
    %cst_5 = arith.constant 9.99999974E-6 : f32
    %15 = vector.broadcast %cst_5 : f32 to vector<18x1xf32>
    %16 = arith.addf %12, %15 : vector<18x1xf32>
    %17 = math.rsqrt %16 : vector<18x1xf32>
    %18 = vector.broadcast %17 : vector<18x1xf32> to vector<18x128xf32>
    %19 = arith.mulf %14, %18 : vector<18x128xf32>
    %20 = arith.truncf %19 : vector<18x128xf32> to vector<18x128xbf16>
    %c0_6 = arith.constant 0 : index
    %c0_7 = arith.constant 0 : index
    %21 = vector.load %arg14[%c0_6, %c0_7] : memref<18x128xbf16, #tpu.memory_space<vmem>>, vector<18x128xbf16>
    tpu.vector_store %arg14[%c0_6, %c0_7], %20 {strides = array<i32>} : memref<18x128xbf16, #tpu.memory_space<vmem>>, vector<18x128xbf16>,
    %cst_8 = arith.constant 0.000000e+00 : f32
    %22 = vector.broadcast %cst_8 : f32 to vector<18x128xf32>
    %c0_9 = arith.constant 0 : index
    %c0_10 = arith.constant 0 : index
    %c0_11 = arith.constant 0 : index
    %23 = vector.load %arg13[%c0_9, %c0_10, %c0_11] : memref<1x18x128xf32, #tpu.memory_space<vmem>>, vector<1x18x128xf32>
    %24 = vector.shape_cast %23 : vector<1x18x128xf32> to vector<18x128xf32>
    %25 = vector.shape_cast %22 : vector<18x128xf32> to vector<1x18x128xf32>
    tpu.vector_store %arg13[%c0_9, %c0_10, %c0_11], %25 {strides = array<i32>} : memref<1x18x128xf32, #tpu.memory_space<vmem>>, vector<1x18x128xf32>,
    %cst_12 = arith.constant 0.000000e+00 : f32
    %26 = vector.broadcast %cst_12 : f32 to vector<18x1xf32>
    %c0_13 = arith.constant 0 : index
    %c0_14 = arith.constant 0 : index
    %27 = vector.load %arg15[%c0_13, %c0_14] : memref<18x1xf32, #tpu.memory_space<vmem>>, vector<18x1xf32>
    tpu.vector_store %arg15[%c0_13, %c0_14], %26 {strides = array<i32>} : memref<18x1xf32, #tpu.memory_space<vmem>>, vector<18x1xf32>,
    %cst_15 = arith.constant 0.000000e+00 : f32
    %28 = vector.broadcast %cst_15 : f32 to vector<18x1xf32>
    %c0_16 = arith.constant 0 : index
    %c0_17 = arith.constant 0 : index
    %29 = vector.load %arg16[%c0_16, %c0_17] : memref<18x1xf32, #tpu.memory_space<vmem>>, vector<18x1xf32>
    tpu.vector_store %arg16[%c0_16, %c0_17], %28 {strides = array<i32>} : memref<18x1xf32, #tpu.memory_space<vmem>>, vector<18x1xf32>,
    %c0_i32 = arith.constant 0 : i32
    %c2_i32 = arith.constant 2 : i32
    %30 = arith.addi %c0_i32, %c2_i32 : i32
    %c1_i32 = arith.constant 1 : i32
    scf.for %arg17 = %c0_i32 to %30 step %c1_i32  : i32 {
      %c1_i32_36 = arith.constant 1 : i32
      %58 = arith.muli %arg17, %c1_i32_36 : i32
      %c0_i32_37 = arith.constant 0 : i32
      %59 = arith.addi %c0_i32_37, %58 : i32
      %c0_38 = arith.constant 0 : index
      %c0_39 = arith.constant 0 : index
      %60 = vector.load %arg14[%c0_38, %c0_39] : memref<18x128xbf16, #tpu.memory_space<vmem>>, vector<18x128xbf16>
      %61 = arith.index_cast %59 : i32 to index
      %c0_40 = arith.constant 0 : index
      %c0_41 = arith.constant 0 : index
      %62 = vector.load %arg2[%61, %c0_40, %c0_41] : memref<2x128x192xbf16, #tpu.memory_space<vmem>>, vector<1x128x192xbf16>
      %63 = vector.shape_cast %62 : vector<1x128x192xbf16> to vector<128x192xbf16>
      %cst_42 = arith.constant dense<0.000000e+00> : vector<18x192xf32>
      %64 = tpu.matmul %60, %63, %cst_42 {dimension_numbers = #tpu.dot_dimension_numbers<[1], [0], [0], [1], [0, 0, 1, 1], [], []>} : vector<18x128xbf16>, vector<128x192xbf16>, vector<18x192xf32> -> vector<18x192xf32>
      %65 = arith.index_cast %59 : i32 to index
      %c0_43 = arith.constant 0 : index
      %c0_44 = arith.constant 0 : index
      %66 = vector.load %arg3[%65, %c0_43, %c0_44] : memref<2x1x192xf32, #tpu.memory_space<vmem>>, vector<1x1x192xf32>
      %67 = vector.shape_cast %66 : vector<1x1x192xf32> to vector<1x192xf32>
      %68 = vector.broadcast %67 : vector<1x192xf32> to vector<18x192xf32>
      %69 = arith.addf %64, %68 : vector<18x192xf32>
      %70 = vector.extract_strided_slice %69 {offsets = [0, 0], sizes = [18, 64], strides = [1, 1]} : vector<18x192xf32> to vector<18x64xf32>
      %71 = vector.extract_strided_slice %69 {offsets = [0, 64], sizes = [18, 64], strides = [1, 1]} : vector<18x192xf32> to vector<18x64xf32>
      %72 = vector.extract_strided_slice %69 {offsets = [0, 128], sizes = [18, 64], strides = [1, 1]} : vector<18x192xf32> to vector<18x64xf32>
      %73 = arith.index_cast %59 : i32 to index
      %c0_45 = arith.constant 0 : index
      %c0_46 = arith.constant 0 : index
      %74 = vector.load %arg7[%73, %c0_45, %c0_46] : memref<2x18x64xf32, #tpu.memory_space<vmem>>, vector<1x18x64xf32>
      %75 = vector.shape_cast %74 : vector<1x18x64xf32> to vector<18x64xf32>
      %76 = arith.mulf %70, %75 : vector<18x64xf32>
      %c63_i32 = arith.constant 63 : i32
      %77 = tpu.dynamic_rotate %70 by %c63_i32 dim 1 : vector<18x64xf32>, i32 -> vector<18x64xf32>
      %78 = arith.index_cast %59 : i32 to index
      %c0_47 = arith.constant 0 : index
      %c0_48 = arith.constant 0 : index
      %79 = vector.load %arg8[%78, %c0_47, %c0_48] : memref<2x18x64xf32, #tpu.memory_space<vmem>>, vector<1x18x64xf32>
      %80 = vector.shape_cast %79 : vector<1x18x64xf32> to vector<18x64xf32>
      %81 = arith.mulf %77, %80 : vector<18x64xf32>
      %82 = arith.addf %76, %81 : vector<18x64xf32>
      %c1_i32_49 = arith.constant 1 : i32
      %83 = tpu.dynamic_rotate %70 by %c1_i32_49 dim 1 : vector<18x64xf32>, i32 -> vector<18x64xf32>
      %84 = arith.index_cast %59 : i32 to index
      %c0_50 = arith.constant 0 : index
      %c0_51 = arith.constant 0 : index
      %85 = vector.load %arg9[%84, %c0_50, %c0_51] : memref<2x18x64xf32, #tpu.memory_space<vmem>>, vector<1x18x64xf32>
      %86 = vector.shape_cast %85 : vector<1x18x64xf32> to vector<18x64xf32>
      %87 = arith.mulf %83, %86 : vector<18x64xf32>
      %88 = arith.addf %82, %87 : vector<18x64xf32>
      %89 = arith.index_cast %59 : i32 to index
      %c0_52 = arith.constant 0 : index
      %c0_53 = arith.constant 0 : index
      %90 = vector.load %arg10[%89, %c0_52, %c0_53] : memref<2x18x64xf32, #tpu.memory_space<vmem>>, vector<1x18x64xf32>
      %91 = vector.shape_cast %90 : vector<1x18x64xf32> to vector<18x64xf32>
      %92 = arith.mulf %71, %91 : vector<18x64xf32>
      %c63_i32_54 = arith.constant 63 : i32
      %93 = tpu.dynamic_rotate %71 by %c63_i32_54 dim 1 : vector<18x64xf32>, i32 -> vector<18x64xf32>
      %94 = arith.index_cast %59 : i32 to index
      %c0_55 = arith.constant 0 : index
      %c0_56 = arith.constant 0 : index
      %95 = vector.load %arg11[%94, %c0_55, %c0_56] : memref<2x18x64xf32, #tpu.memory_space<vmem>>, vector<1x18x64xf32>
      %96 = vector.shape_cast %95 : vector<1x18x64xf32> to vector<18x64xf32>
      %97 = arith.mulf %93, %96 : vector<18x64xf32>
      %98 = arith.addf %92, %97 : vector<18x64xf32>
      %c1_i32_57 = arith.constant 1 : i32
      %99 = tpu.dynamic_rotate %71 by %c1_i32_57 dim 1 : vector<18x64xf32>, i32 -> vector<18x64xf32>
      %100 = arith.index_cast %59 : i32 to index
      %c0_58 = arith.constant 0 : index
      %c0_59 = arith.constant 0 : index
      %101 = vector.load %arg12[%100, %c0_58, %c0_59] : memref<2x18x64xf32, #tpu.memory_space<vmem>>, vector<1x18x64xf32>
      %102 = vector.shape_cast %101 : vector<1x18x64xf32> to vector<18x64xf32>
      %103 = arith.mulf %99, %102 : vector<18x64xf32>
      %104 = arith.addf %98, %103 : vector<18x64xf32>
      %105 = arith.truncf %88 : vector<18x64xf32> to vector<18x64xbf16>
      %106 = arith.truncf %104 : vector<18x64xf32> to vector<18x64xbf16>
      %107 = arith.truncf %72 : vector<18x64xf32> to vector<18x64xbf16>
      %108 = vector.extract_strided_slice %105 {offsets = [0, 0], sizes = [18, 32], strides = [1, 1]} : vector<18x64xbf16> to vector<18x32xbf16>
      %109 = vector.extract_strided_slice %106 {offsets = [0, 0], sizes = [18, 32], strides = [1, 1]} : vector<18x64xbf16> to vector<18x32xbf16>
      %110 = vector.extract_strided_slice %107 {offsets = [0, 0], sizes = [18, 32], strides = [1, 1]} : vector<18x64xbf16> to vector<18x32xbf16>
      %cst_60 = arith.constant dense<0.000000e+00> : vector<18x18xf32>
      %111 = tpu.matmul %108, %109, %cst_60 {dimension_numbers = #tpu.dot_dimension_numbers<[1], [1], [0], [0], [0, 0, 1, 0], [], []>} : vector<18x32xbf16>, vector<18x32xbf16>, vector<18x18xf32> -> vector<18x18xf32>
      %cst_61 = arith.constant dense<0xFF800000> : vector<18xf32>
      %112 = vector.multi_reduction <maximumf>, %111, %cst_61 [1] : vector<18x18xf32> to vector<18xf32>
      %113 = vector.shape_cast %112 : vector<18xf32> to vector<18x1xf32>
      %114 = vector.broadcast %113 : vector<18x1xf32> to vector<18x18xf32>
      %115 = arith.subf %111, %114 : vector<18x18xf32>
      %116 = math.exp %115 : vector<18x18xf32>
      %cst_62 = arith.constant dense<0.000000e+00> : vector<18xf32>
      %117 = vector.multi_reduction <add>, %116, %cst_62 [1] : vector<18x18xf32> to vector<18xf32>
      %118 = vector.shape_cast %117 : vector<18xf32> to vector<18x1xf32>
      %119 = arith.truncf %116 : vector<18x18xf32> to vector<18x18xbf16>
      %cst_63 = arith.constant dense<0.000000e+00> : vector<18x32xf32>
      %120 = tpu.matmul %119, %110, %cst_63 {dimension_numbers = #tpu.dot_dimension_numbers<[1], [0], [0], [1], [0, 0, 1, 1], [], []>} : vector<18x18xbf16>, vector<18x32xbf16>, vector<18x32xf32> -> vector<18x32xf32>
      %121 = tpu.reciprocal %118 {approx = true} : vector<18x1xf32> -> vector<18x1xf32>
      %122 = vector.broadcast %121 : vector<18x1xf32> to vector<18x32xf32>
      %123 = arith.mulf %120, %122 : vector<18x32xf32>
      %124 = vector.extract_strided_slice %105 {offsets = [0, 32], sizes = [18, 32], strides = [1, 1]} : vector<18x64xbf16> to vector<18x32xbf16>
      %125 = vector.extract_strided_slice %106 {offsets = [0, 32], sizes = [18, 32], strides = [1, 1]} : vector<18x64xbf16> to vector<18x32xbf16>
      %126 = vector.extract_strided_slice %107 {offsets = [0, 32], sizes = [18, 32], strides = [1, 1]} : vector<18x64xbf16> to vector<18x32xbf16>
      %cst_64 = arith.constant dense<0.000000e+00> : vector<18x18xf32>
      %127 = tpu.matmul %124, %125, %cst_64 {dimension_numbers = #tpu.dot_dimension_numbers<[1], [1], [0], [0], [0, 0, 1, 0], [], []>} : vector<18x32xbf16>, vector<18x32xbf16>, vector<18x18xf32> -> vector<18x18xf32>
      %cst_65 = arith.constant dense<0xFF800000> : vector<18xf32>
      %128 = vector.multi_reduction <maximumf>, %127, %cst_65 [1] : vector<18x18xf32> to vector<18xf32>
      %129 = vector.shape_cast %128 : vector<18xf32> to vector<18x1xf32>
      %130 = vector.broadcast %129 : vector<18x1xf32> to vector<18x18xf32>
      %131 = arith.subf %127, %130 : vector<18x18xf32>
      %132 = math.exp %131 : vector<18x18xf32>
      %cst_66 = arith.constant dense<0.000000e+00> : vector<18xf32>
      %133 = vector.multi_reduction <add>, %132, %cst_66 [1] : vector<18x18xf32> to vector<18xf32>
      %134 = vector.shape_cast %133 : vector<18xf32> to vector<18x1xf32>
      %135 = arith.truncf %132 : vector<18x18xf32> to vector<18x18xbf16>
      %cst_67 = arith.constant dense<0.000000e+00> : vector<18x32xf32>
      %136 = tpu.matmul %135, %126, %cst_67 {dimension_numbers = #tpu.dot_dimension_numbers<[1], [0], [0], [1], [0, 0, 1, 1], [], []>} : vector<18x18xbf16>, vector<18x32xbf16>, vector<18x32xf32> -> vector<18x32xf32>
      %137 = tpu.reciprocal %134 {approx = true} : vector<18x1xf32> -> vector<18x1xf32>
      %138 = vector.broadcast %137 : vector<18x1xf32> to vector<18x32xf32>
      %139 = arith.mulf %136, %138 : vector<18x32xf32>
      %140 = tpu.concatenate %123, %139 in 1 : vector<18x32xf32>, vector<18x32xf32> -> vector<18x64xf32>
      %c0_68 = arith.constant 0 : index
      %c0_69 = arith.constant 0 : index
      %141 = vector.load %arg15[%c0_68, %c0_69] : memref<18x1xf32, #tpu.memory_space<vmem>>, vector<18x1xf32>
      %cst_70 = arith.constant dense<0.000000e+00> : vector<18xf32>
      %142 = vector.multi_reduction <add>, %140, %cst_70 [1] : vector<18x64xf32> to vector<18xf32>
      %143 = vector.shape_cast %142 : vector<18xf32> to vector<18x1xf32>
      %144 = arith.addf %141, %143 : vector<18x1xf32>
      %c0_71 = arith.constant 0 : index
      %c0_72 = arith.constant 0 : index
      %145 = vector.load %arg15[%c0_71, %c0_72] : memref<18x1xf32, #tpu.memory_space<vmem>>, vector<18x1xf32>
      tpu.vector_store %arg15[%c0_71, %c0_72], %144 {strides = array<i32>} : memref<18x1xf32, #tpu.memory_space<vmem>>, vector<18x1xf32>,
      %c0_73 = arith.constant 0 : index
      %c0_74 = arith.constant 0 : index
      %146 = vector.load %arg16[%c0_73, %c0_74] : memref<18x1xf32, #tpu.memory_space<vmem>>, vector<18x1xf32>
      %147 = arith.mulf %140, %140 : vector<18x64xf32>
      %cst_75 = arith.constant dense<0.000000e+00> : vector<18xf32>
      %148 = vector.multi_reduction <add>, %147, %cst_75 [1] : vector<18x64xf32> to vector<18xf32>
      %149 = vector.shape_cast %148 : vector<18xf32> to vector<18x1xf32>
      %150 = arith.addf %146, %149 : vector<18x1xf32>
      %c0_76 = arith.constant 0 : index
      %c0_77 = arith.constant 0 : index
      %151 = vector.load %arg16[%c0_76, %c0_77] : memref<18x1xf32, #tpu.memory_space<vmem>>, vector<18x1xf32>
      tpu.vector_store %arg16[%c0_76, %c0_77], %150 {strides = array<i32>} : memref<18x1xf32, #tpu.memory_space<vmem>>, vector<18x1xf32>,
      %c0_78 = arith.constant 0 : index
      %c0_79 = arith.constant 0 : index
      %c0_80 = arith.constant 0 : index
      %152 = vector.load %arg13[%c0_78, %c0_79, %c0_80] : memref<1x18x128xf32, #tpu.memory_space<vmem>>, vector<1x18x128xf32>
      %153 = vector.shape_cast %152 : vector<1x18x128xf32> to vector<18x128xf32>
      %154 = arith.truncf %140 : vector<18x64xf32> to vector<18x64xbf16>
      %155 = arith.index_cast %59 : i32 to index
      %c0_81 = arith.constant 0 : index
      %c0_82 = arith.constant 0 : index
      %156 = vector.load %arg4[%155, %c0_81, %c0_82] : memref<2x64x128xbf16, #tpu.memory_space<vmem>>, vector<1x64x128xbf16>
      %157 = vector.shape_cast %156 : vector<1x64x128xbf16> to vector<64x128xbf16>
      %cst_83 = arith.constant dense<0.000000e+00> : vector<18x128xf32>
      %158 = tpu.matmul %154, %157, %cst_83 {dimension_numbers = #tpu.dot_dimension_numbers<[1], [0], [0], [1], [0, 0, 1, 1], [], []>} : vector<18x64xbf16>, vector<64x128xbf16>, vector<18x128xf32> -> vector<18x128xf32>
      %159 = arith.addf %153, %158 : vector<18x128xf32>
      %c0_84 = arith.constant 0 : index
      %c0_85 = arith.constant 0 : index
      %c0_86 = arith.constant 0 : index
      %160 = vector.load %arg13[%c0_84, %c0_85, %c0_86] : memref<1x18x128xf32, #tpu.memory_space<vmem>>, vector<1x18x128xf32>
      %161 = vector.shape_cast %160 : vector<1x18x128xf32> to vector<18x128xf32>
      %162 = vector.shape_cast %159 : vector<18x128xf32> to vector<1x18x128xf32>
      tpu.vector_store %arg13[%c0_84, %c0_85, %c0_86], %162 {strides = array<i32>} : memref<1x18x128xf32, #tpu.memory_space<vmem>>, vector<1x18x128xf32>,
    }
    %c2_i32_18 = arith.constant 2 : i32
    %c0_19 = arith.constant 0 : index
    %c0_20 = arith.constant 0 : index
    %31 = vector.load %arg15[%c0_19, %c0_20] : memref<18x1xf32, #tpu.memory_space<vmem>>, vector<18x1xf32>
    %cst_21 = arith.constant 7.812500e-03 : f32
    %32 = vector.broadcast %cst_21 : f32 to vector<18x1xf32>
    %33 = arith.mulf %31, %32 : vector<18x1xf32>
    %c0_22 = arith.constant 0 : index
    %c0_23 = arith.constant 0 : index
    %34 = vector.load %arg16[%c0_22, %c0_23] : memref<18x1xf32, #tpu.memory_space<vmem>>, vector<18x1xf32>
    %cst_24 = arith.constant 7.812500e-03 : f32
    %35 = vector.broadcast %cst_24 : f32 to vector<18x1xf32>
    %36 = arith.mulf %34, %35 : vector<18x1xf32>
    %37 = arith.mulf %33, %33 : vector<18x1xf32>
    %38 = arith.subf %36, %37 : vector<18x1xf32>
    %cst_25 = arith.constant 9.99999974E-6 : f32
    %39 = vector.broadcast %cst_25 : f32 to vector<18x1xf32>
    %40 = arith.addf %38, %39 : vector<18x1xf32>
    %41 = math.rsqrt %40 : vector<18x1xf32>
    %c0_26 = arith.constant 0 : index
    %c0_27 = arith.constant 0 : index
    %c0_28 = arith.constant 0 : index
    %42 = vector.load %arg13[%c0_26, %c0_27, %c0_28] : memref<1x18x128xf32, #tpu.memory_space<vmem>>, vector<1x18x128xf32>
    %43 = vector.shape_cast %42 : vector<1x18x128xf32> to vector<18x128xf32>
    %44 = vector.broadcast %41 : vector<18x1xf32> to vector<18x128xf32>
    %45 = arith.mulf %43, %44 : vector<18x128xf32>
    %46 = arith.mulf %33, %41 : vector<18x1xf32>
    %c0_29 = arith.constant 0 : index
    %c0_30 = arith.constant 0 : index
    %47 = vector.load %arg5[%c0_29, %c0_30] : memref<1x128xf32, #tpu.memory_space<vmem>>, vector<1x128xf32>
    %48 = vector.broadcast %46 : vector<18x1xf32> to vector<18x128xf32>
    %49 = vector.broadcast %47 : vector<1x128xf32> to vector<18x128xf32>
    %50 = arith.mulf %48, %49 : vector<18x128xf32>
    %51 = arith.subf %45, %50 : vector<18x128xf32>
    %c0_31 = arith.constant 0 : index
    %c0_32 = arith.constant 0 : index
    %52 = vector.load %arg6[%c0_31, %c0_32] : memref<1x128xf32, #tpu.memory_space<vmem>>, vector<1x128xf32>
    %53 = vector.broadcast %52 : vector<1x128xf32> to vector<18x128xf32>
    %54 = arith.addf %51, %53 : vector<18x128xf32>
    %c0_33 = arith.constant 0 : index
    %c0_34 = arith.constant 0 : index
    %c0_35 = arith.constant 0 : index
    %55 = vector.load %arg13[%c0_33, %c0_34, %c0_35] : memref<1x18x128xf32, #tpu.memory_space<vmem>>, vector<1x18x128xf32>
    %56 = vector.shape_cast %55 : vector<1x18x128xf32> to vector<18x128xf32>
    %57 = vector.shape_cast %54 : vector<18x128xf32> to vector<1x18x128xf32>
    tpu.vector_store %arg13[%c0_33, %c0_34, %c0_35], %57 {strides = array<i32>} : memref<1x18x128xf32, #tpu.memory_space<vmem>>, vector<1x18x128xf32>,
    return
  }
  func.func @transform_0(%arg0: i32) -> (i32, i32, i32) {
    %c0_i32 = arith.constant 0 : i32
    %c0_i32_0 = arith.constant 0 : i32
    %c0_i32_1 = arith.constant 0 : i32
    return %arg0, %c0_i32, %c0_i32_0 : i32, i32, i32
  }
  func.func @transform_1(%arg0: i32) -> (i32, i32, i32) {
    %c0_i32 = arith.constant 0 : i32
    %c0_i32_0 = arith.constant 0 : i32
    %c0_i32_1 = arith.constant 0 : i32
    %c0_i32_2 = arith.constant 0 : i32
    return %c0_i32, %c0_i32_0, %c0_i32_1 : i32, i32, i32
  }
  func.func @transform_2(%arg0: i32) -> (i32, i32, i32) {
    %c0_i32 = arith.constant 0 : i32
    %c0_i32_0 = arith.constant 0 : i32
    %c0_i32_1 = arith.constant 0 : i32
    %c0_i32_2 = arith.constant 0 : i32
    return %c0_i32, %c0_i32_0, %c0_i32_1 : i32, i32, i32
  }
  func.func @transform_3(%arg0: i32) -> (i32, i32, i32) {
    %c0_i32 = arith.constant 0 : i32
    %c0_i32_0 = arith.constant 0 : i32
    %c0_i32_1 = arith.constant 0 : i32
    %c0_i32_2 = arith.constant 0 : i32
    return %c0_i32, %c0_i32_0, %c0_i32_1 : i32, i32, i32
  }
  func.func @transform_4(%arg0: i32) -> (i32, i32) {
    %c0_i32 = arith.constant 0 : i32
    %c0_i32_0 = arith.constant 0 : i32
    %c0_i32_1 = arith.constant 0 : i32
    return %c0_i32, %c0_i32_0 : i32, i32
  }
  func.func @transform_5(%arg0: i32) -> (i32, i32) {
    %c0_i32 = arith.constant 0 : i32
    %c0_i32_0 = arith.constant 0 : i32
    %c0_i32_1 = arith.constant 0 : i32
    return %c0_i32, %c0_i32_0 : i32, i32
  }
  func.func @transform_6(%arg0: i32) -> (i32, i32, i32) {
    %c0_i32 = arith.constant 0 : i32
    %c0_i32_0 = arith.constant 0 : i32
    %c0_i32_1 = arith.constant 0 : i32
    %c0_i32_2 = arith.constant 0 : i32
    return %c0_i32, %c0_i32_0, %c0_i32_1 : i32, i32, i32
  }
  func.func @transform_7(%arg0: i32) -> (i32, i32, i32) {
    %c0_i32 = arith.constant 0 : i32
    %c0_i32_0 = arith.constant 0 : i32
    %c0_i32_1 = arith.constant 0 : i32
    %c0_i32_2 = arith.constant 0 : i32
    return %c0_i32, %c0_i32_0, %c0_i32_1 : i32, i32, i32
  }
  func.func @transform_8(%arg0: i32) -> (i32, i32, i32) {
    %c0_i32 = arith.constant 0 : i32
    %c0_i32_0 = arith.constant 0 : i32
    %c0_i32_1 = arith.constant 0 : i32
    %c0_i32_2 = arith.constant 0 : i32
    return %c0_i32, %c0_i32_0, %c0_i32_1 : i32, i32, i32
  }
  func.func @transform_9(%arg0: i32) -> (i32, i32, i32) {
    %c0_i32 = arith.constant 0 : i32
    %c0_i32_0 = arith.constant 0 : i32
    %c0_i32_1 = arith.constant 0 : i32
    %c0_i32_2 = arith.constant 0 : i32
    return %c0_i32, %c0_i32_0, %c0_i32_1 : i32, i32, i32
  }
  func.func @transform_10(%arg0: i32) -> (i32, i32, i32) {
    %c0_i32 = arith.constant 0 : i32
    %c0_i32_0 = arith.constant 0 : i32
    %c0_i32_1 = arith.constant 0 : i32
    %c0_i32_2 = arith.constant 0 : i32
    return %c0_i32, %c0_i32_0, %c0_i32_1 : i32, i32, i32
  }
  func.func @transform_11(%arg0: i32) -> (i32, i32, i32) {
    %c0_i32 = arith.constant 0 : i32
    %c0_i32_0 = arith.constant 0 : i32
    %c0_i32_1 = arith.constant 0 : i32
    %c0_i32_2 = arith.constant 0 : i32
    return %c0_i32, %c0_i32_0, %c0_i32_1 : i32, i32, i32
  }
  func.func @transform_12(%arg0: i32) -> (i32, i32, i32) {
    %c0_i32 = arith.constant 0 : i32
    %c0_i32_0 = arith.constant 0 : i32
    %c0_i32_1 = arith.constant 0 : i32
    return %arg0, %c0_i32, %c0_i32_0 : i32, i32, i32
  }
}

</mosaic_0001>

<bundles_post_ra>
// kernel: tpu_custom_call.1
= control target key start
LH: loop header
LB: loop body
LE: loop exit
PB: predicated region body
PF: predicated region fallthrough
CT: control target
= control target key end

     0   :  { %s1856_s21 = smov 0   ;;  %s2125_s0 = inlined_call_operand.vmem [shape: f32[2,18,128], index: 0, kind: input, shape index: {}]   ;;  %s2126_s1 = inlined_call_operand.vmem [shape: bf16[2,128,192], index: 1, kind: input, shape index: {}]   ;;  %s2127_s2 = inlined_call_operand.vmem [shape: f32[2,1,192], index: 2, kind: input, shape index: {}]   ;;  %s2128_s3 = inlined_call_operand.vmem [shape: bf16[2,64,128], index: 3, kind: input, shape index: {}]   ;;  %s2129_s4 = inlined_call_operand.vmem [shape: f32[1,128], index: 4, kind: input, shape index: {}]   ;;  %s2130_s5 = inlined_call_operand.vmem [shape: f32[1,128], index: 5, kind: input, shape index: {}]   ;;  %s2131_s6 = inlined_call_operand.vmem [shape: f32[2,18,64], index: 6, kind: input, shape index: {}]   ;;  %s2132_s7 = inlined_call_operand.vmem [shape: f32[2,18,64], index: 7, kind: input, shape index: {}]   ;;  %s2133_s8 = inlined_call_operand.vmem [shape: f32[2,18,64], index: 8, kind: input, shape index: {}]   ;;  %s2134_s9 = inlined_call_operand.vmem [shape: f32[2,18,64], index: 9, kind: input, shape index: {}]   ;;  %s2135_s10 = inlined_call_operand.vmem [shape: f32[2,18,64], index: 10, kind: input, shape index: {}]   ;;  %s2136_s11 = inlined_call_operand.vmem [shape: f32[2,18,64], index: 11, kind: input, shape index: {}]   ;;  %s2137_s12 = inlined_call_operand.vmem [shape: f32[2,18,128], index: 12, kind: output, shape index: {}]  }
   0x1 LB: > { %s1537_s22 = sadd.s32 4294967295, %s1775_s21   ;;  %p1541_p0 = scmp.ge.s32.totalorder %s1775_s21, 1  ;;  %s1775_s21 = sphi %s1856_s21, %s22_s21  }
   0x2   : > { %p362_p1 = scmp.lt.s32.totalorder %s1775_s21, 3 }
   0x4   : > { %p363_p2 = pnand %p1541_p0, %p362_p1 }
   0x5   : > { %p404_p3 = scmp.lt.s32.totalorder (!%p363_p2), %s1537_s22, 1  ;;  %s1883_s30 = smov (!%p363_p2), 0  }
   0x6   : > { %366 = sbr.rel (%p363_p2) target bundleno = 2561 (0xa01), region = 68 }
   0xb   : > { %vm474_vm0 = vcmask 7168   ;;  %vm477_vm1 = vcmask 1024   ;;  %v1781_v0 = vmov 0.0   ;;  %s2139_s22 = smov (!%p404_p3, %s1537_s22), 1  ;;  %vm422_vm2 = vcmask 1041408  }
   0xc   : > { %475 = vst.msk [vmem:[#allocation3] sm:$0xff] %vm474_vm0, %v1781_v0  ;;  %476 = vst.msk [vmem:[#allocation3 + $0x8] sm:$0xff] %vm474_vm0, %v1781_v0  ;;  %s1670_s23 = smul.u32 24, %s2139_s22 }
   0xd   : > { %478 = vst.msk [vmem:[#allocation3 + $0x10] sm:$0x3] %vm477_vm1, %v1781_v0  ;;  %481 = vst.msk [vmem:[#allocation4 + $0x10] sm:$0x3] %vm477_vm1, %v1781_v0 }
   0xe   : > { %479 = vst.msk [vmem:[#allocation4] sm:$0xff] %vm474_vm0, %v1781_v0  ;;  %480 = vst.msk [vmem:[#allocation4 + $0x8] sm:$0xff] %vm474_vm0, %v1781_v0  ;;  %s408_s26 = scalar_lea.vmem %s2125_s0, %s1670_s23  ;;  %s1876_s29 = scalar_lea.vmem %s2137_s12, %s1670_s23 }
   0xf   : > { %v416_v1 = vld [vmem:[%s408_s26 + $0x8] sm:$0xff]  ;;  %471 = vst [vmem:[%s1876_s29] sm:$0xff] %v1781_v0  ;;  %472 = vst [vmem:[%s1876_s29 + $0x8] sm:$0xff] %v1781_v0  ;;  %v417_v2 = vld [vmem:[%s408_s26 + $0x10] sm:$0x3] }
  0x10   : > { %473 = vst [vmem:[%s1876_s29 + $0x10] sm:$0x3] %v1781_v0  ;;  %420 = vadd.xlane.f32.xlu1 %v416_v1  ;;  %v423_v3 = vsel %vm422_vm2, %v417_v2, 0.0  ;;  %v415_v4 = vld [vmem:[%s408_s26] sm:$0xff] }
  0x11   : > { %424 = vadd.xlane.f32.xlu0 %v423_v3 }
  0x15   : > { %418 = vadd.xlane.f32.xlu0 %v415_v4 }
  0x99   : > { %v421_v5 = vpop.xlane.xlu1 %420 }
  0x9a   : > { %v428_v6 = vmul.f32 0.0078125, %v421_v5  ;;  %v425_v7 = vpop.xlane.xlu0 %424 }
  0x9b   : > { %v429_v9 = vmul.f32 0.0078125, %v425_v7 }
  0x9c   : > { %v431_v8 = vsub.f32 %v416_v1, %v428_v6 }
  0x9d   : > { %v432_v13 = vsub.f32 %v417_v2, %v429_v9 }
  0x9e   : > { %v419_v10 = vpop.xlane.xlu0 %418  ;;  %v434_v11 = vmul.f32 %v431_v8, %v431_v8 }
  0x9f   : > { %v427_v12 = vmul.f32 0.0078125, %v419_v10  ;;  %v435_v16 = vmul.f32 %v432_v13, %v432_v13 }
  0xa0   : > { %438 = vadd.xlane.f32.xlu0 %v434_v11 }
  0xa1   : > { %v430_v14 = vsub.f32 %v415_v4, %v427_v12  ;;  %v440_v17 = vsel %vm422_vm2, %v435_v16, 0.0 }
  0xa3   : > { %v433_v15 = vmul.f32 %v430_v14, %v430_v14 }
  0xa5   : > { %436 = vadd.xlane.f32.xlu1 %v433_v15 }
  0xa9   : > { %441 = vadd.xlane.f32.xlu1 %v440_v17 }
 0x129   : > { %v439_v18 = vpop.xlane.xlu0 %438 }
 0x12a   : > { %v444_v19 = vmul.f32 0.0078125, %v439_v18 }
 0x12c   : > { %v447_v20 = vadd.f32 1e-05, %v444_v19 }
 0x12e   : > { %v437_v21 = vpop.xlane.xlu1 %436  ;;  %1697 = vrsqrt.f32 %v447_v20 }
 0x12f   : > { %v443_v22 = vmul.f32 0.0078125, %v437_v21 }
 0x131   : > { %v446_v23 = vadd.f32 1e-05, %v443_v22 }
 0x132   : > { %v442_v24 = vpop.xlane.xlu1 %441 }
 0x133   : > { %1699 = vrsqrt.f32 %v446_v23  ;;  %v445_v25 = vmul.f32 0.0078125, %v442_v24 }
 0x135   : > { %v448_v26 = vadd.f32 1e-05, %v445_v25 }
 0x137   : > { %1701 = vrsqrt.f32 %v448_v26 }
 0x13b   : > { %v1698_v27 = vpop.eup %1697 }
 0x13c   : > { %v453_v29 = vmul.f32 %v1698_v27, %v431_v8 }
 0x140   : > { %v1700_v28 = vpop.eup %1699 }
 0x141   : > { %v452_v30 = vmul.f32 %v1700_v28, %v430_v14 }
 0x143   : > { %v1596_v31 = vpack.c.bf16 %v453_v29, %v452_v30 }
 0x144   : > { %v1702_v32 = vpop.eup %1701 }
 0x145   : > { %1597 = vst [vmem:[#allocation2] sm:$0xff] %v1596_v31   ;;  %v454_v33 = vmul.f32 %v1702_v32, %v432_v13 }
 0x147   : > { %v1590_v34 = vpack.c.bf16 %v454_v33, %v454_v33 }
 0x149   : > { %470 = vst [vmem:[#allocation2 + $0x8] sm:$0x1] %v1590_v34 }
 0x14a LB: >> { %v1782_v35 = vmov 0   ;;  %s1591_s13 = sshll.u32 %s1779_s30, 7  ;;  %v514_v54 = vlaneseq  ;;  %s1549_s17 = sshll.u32 %s1779_s30, 1  ;;  %vm673_vm3 = vcmask 1048064   ;;  %vm889_vm4 = vcmask 261120   ;;  %s1779_s30 = sphi %s1883_s30, %s487_s30  }
 0x14b   : >> { %646 = vmatprep.mubr.bf16.mxu0 %v1782_v35  ;;  %s493_s16 = scalar_lea.vmem %s2126_s1, %s1591_s13  ;;  %s511_s20 = scalar_lea.vmem %s2127_s2, %s1549_s17  ;;  %vm987_vm5 = vcmask 1040384   ;;  %vm950_vm6 = vcmask 146432   ;;  %vm957_vm7 = vcmask 140288   ;;  %vm1232_vm8 = vcmask 523264  }
 0x14c   : >> { %v1703_v36 = vld [vmem:[%s493_s16 + $0x74] ss:$8 sps:$4 sm:$0xff]   ;;  %v1705_v37 = vld [vmem:[%s493_s16 + $0x70] ss:$8 sps:$4 sm:$0xff]   ;;  %v1706_v38 = vld [vmem:[%s493_s16 + $0x64] ss:$8 sps:$4 sm:$0xff]  }
 0x14d   : >> { %614 = vmatprep.subr.bf16.mxu0 %v1703_v36  ;;  %v1708_v39 = vld [vmem:[%s493_s16 + $0x60] ss:$8 sps:$4 sm:$0xff]   ;;  %v1709_v40 = vld [vmem:[%s493_s16 + $0x54] ss:$8 sps:$4 sm:$0xff]   ;;  %v1711_v41 = vld [vmem:[%s493_s16 + $0x50] ss:$8 sps:$4 sm:$0xff]  }
 0x14e   : >> { %615 = vmatpush1.bf16.msra.mxu0 %v1705_v37  ;;  %v1712_v42 = vld [vmem:[%s493_s16 + $0x44] ss:$8 sps:$4 sm:$0xff]   ;;  %v1714_v43 = vld [vmem:[%s493_s16 + $0x40] ss:$8 sps:$4 sm:$0xff]   ;;  %v1715_v44 = vld [vmem:[%s493_s16 + $0x34] ss:$8 sps:$4 sm:$0xff]  }
 0x14f   : >> { %616 = vmatprep.subr.bf16.mxu0 %v1706_v38  ;;  %v1717_v45 = vld [vmem:[%s493_s16 + $0x30] ss:$8 sps:$4 sm:$0xff]   ;;  %v1718_v46 = vld [vmem:[%s493_s16 + $0x24] ss:$8 sps:$4 sm:$0xff]   ;;  %v1720_v47 = vld [vmem:[%s493_s16 + $0x20] ss:$8 sps:$4 sm:$0xff]  }
 0x150   : >> { %v1721_v48 = vld [vmem:[%s493_s16 + $0x14] ss:$8 sps:$4 sm:$0xff]   ;;  %v1723_v49 = vld [vmem:[%s493_s16 + $0x10] ss:$8 sps:$4 sm:$0xff]   ;;  %v1724_v50 = vld [vmem:[%s493_s16 + $0x4] ss:$8 sps:$4 sm:$0xff]  }
 0x151   : >> { %v1726_v51 = vld [vmem:[%s493_s16] ss:$8 sps:$4 sm:$0xff]   ;;  %v515_v55 = vshrl.u32 %v514_v54, 7  ;;  %s1783_s22 = smov 64   ;;  %s1918_s23 = smul.u32 24, %s1779_s30  ;;  %vm1239_vm9 = vcmask 517120  }
 0x152   : >> { %617 = vmatpush1.bf16.msra.mxu0 %v1708_v39  ;;  %v1727_v52 = vld [vmem:[#allocation2] sm:$0xff]   ;;  %v1728_v53 = vld [vmem:[#allocation2 + $0x8] ss:$0 sps:$4 sm:$0x11]   ;;  %s1784_s14 = smov 63   ;;  %s1785_s15 = smov 1  }
 0x153   : >> { %618 = vmatprep.subr.bf16.mxu0 %v1709_v40  ;;  %v516_v56 = vsub.s32 0, %v515_v55  ;;  %v520_v57 = vsub.s32 1, %v515_v55  ;;  %v512_v58 = vld [vmem:[%s511_s20] sm:$0x3]  ;;  %s843_s26 = scalar_lea.vmem %s2136_s11, %s1918_s23  ;;  %s809_s13 = scalar_lea.vmem %s2135_s10, %s1918_s23 }
 0x154   : >> { %v846_v14 = vld [vmem:[%s843_s26 + $0x10] sm:$0x3]  ;;  %v811_v22 = vld [vmem:[%s809_s13 + $0x8] sm:$0xff]  ;;  %v810_v23 = vld [vmem:[%s809_s13] sm:$0xff]  ;;  %s760_s18 = scalar_lea.vmem %s2134_s9, %s1918_s23  ;;  %s692_s24 = scalar_lea.vmem %s2132_s7, %s1918_s23 }
 0x155   : >> { %v517_v61 = vrot.slane %v512_v58, %v516_v56  ;;  %v1896_v62 = vrot.slane %v512_v58, %v520_v57  ;;  %v812_v15 = vld [vmem:[%s809_s13 + $0x10] sm:$0x3]  ;;  %v845_v24 = vld [vmem:[%s843_s26 + $0x8] sm:$0xff]  ;;  %v844_v25 = vld [vmem:[%s843_s26] sm:$0xff]  ;;  %s726_s27 = scalar_lea.vmem %s2133_s8, %s1918_s23  ;;  %s1786_s28 = smov 127  }
 0x156   : >> { %619 = vmatpush1.bf16.msra.mxu0 %v1711_v41  ;;  %v763_v26 = vld [vmem:[%s760_s18 + $0x10] sm:$0x3]  ;;  %v762_v27 = vld [vmem:[%s760_s18 + $0x8] sm:$0xff]  ;;  %v761_v28 = vld [vmem:[%s760_s18] sm:$0xff]  ;;  %s1789_s16 = smov 96   ;;  %s1592_s17 = sshll.u32 %s1779_s30, 5 }
 0x157   : >> { %620 = vmatprep.subr.bf16.mxu0 %v1712_v42  ;;  %v728_v54 = vld [vmem:[%s726_s27 + $0x8] sm:$0xff]  ;;  %v727_v57 = vld [vmem:[%s726_s27] sm:$0xff]  ;;  %v729_v58 = vld [vmem:[%s726_s27 + $0x10] sm:$0x3]  ;;  %s1277_s20 = scalar_lea.vmem %s2128_s3, %s1592_s17  ;;  %s487_s30 = sadd.s32 1, %s1779_s30  }
 0x158   : >> { %v694_v56 = vld [vmem:[%s692_s24 + $0x8] sm:$0xff]  ;;  %p484_p4 = scmp.ge.s32.totalorder %s487_s30, 2  }
 0x15a   : >> { %621 = vmatpush1.bf16.msra.mxu0 %v1714_v43 }
 0x15b   : >> { %622 = vmatprep.subr.bf16.mxu0 %v1715_v44 }
 0x15e   : >> { %623 = vmatpush1.bf16.msra.mxu0 %v1717_v45 }
 0x15f   : >> { %624 = vmatprep.subr.bf16.mxu0 %v1718_v46 }
 0x162   : >> { %625 = vmatpush1.bf16.msra.mxu0 %v1720_v47 }
 0x163   : >> { %626 = vmatprep.subr.bf16.mxu0 %v1721_v48 }
 0x166   : >> { %627 = vmatpush1.bf16.msra.mxu0 %v1723_v49 }
 0x167   : >> { %628 = vmatprep.subr.bf16.mxu0 %v1724_v50  ;;  %v693_v50 = vld [vmem:[%s692_s24] sm:$0xff] }
 0x16a   : >> { %629 = vmatpush1.bf16.msra.mxu0 %v1726_v51 }
 0x16d   : >> { %647 = vmatmul.mubr.bf16.vlgmr.msra.gmra.mxu0 %v1727_v52  ;;  %v695_v52 = vld [vmem:[%s692_s24 + $0x10] sm:$0x3] }
 0x16e   : >> { %656 = vmatprep.mubr.bf16.mxu0 %v1782_v35 }
 0x175   : >> { %657 = vmatmul.mubr.bf16.gmra.mxu0 %v1728_v53 }
 0x22d   : >> { %v648_v59 = vpop.f32.mrf.mxu0 }
 0x22e   : >> { %v1912_v9 = vadd.f32 %v648_v59, %v517_v61 }
 0x22f   : >> { %v650_v60 = vpop.f32.mrf.mxu0 }
 0x230   : >> { %v651_v2 = vadd.f32 %v650_v60, %v1896_v62 }
 0x231   : >> { %v652_v63 = vpop.f32.mrf.mxu0 }
 0x232   : >> { %v1898_v0 = vadd.f32 %v652_v63, %v517_v61 }
 0x233   : >> { %v654_v1 = vpop.f32.mrf.mxu0 }
 0x234   : >> { %v655_v3 = vadd.f32 %v654_v1, %v1896_v62  ;;  %784 = vrot.lane.b32.xlu1 %v1898_v0, %s1783_s22 }
 0x235   : >> { %v658_v4 = vpop.f32.mrf.mxu0 }
 0x236   : >> { %v1904_v5 = vpack.c.bf16 %v655_v3, %v651_v2  ;;  %v1906_v6 = vadd.f32 %v658_v4, %v517_v61 }
 0x237   : >> { %v1908_v7 = vpop.f32.mrf.mxu0 }
 0x238   : >> { %786 = vrot.lane.b32.xlu0 %v1906_v6, %s1783_s22 }
 0x239   : >> { %v662_v8 = vpop.f32.mrf.mxu0 }
 0x23b   : >> { %v663_v10 = vpop.f32.mrf.mxu0 }
 0x23c   : >> { %782 = vrot.lane.b32.xlu0 %v1912_v9, %s1783_s22 }
 0x2a6   : >> { %v785_v12 = vpop.permute.xlu1 %784 }
 0x2aa   : >> { %v787_v11 = vpop.permute.xlu0 %786 }
 0x2ab   : >> { %797 = vrot.lane.b32.xlu1 %v787_v11, %s1783_s22 }
 0x2ae   : >> { %v783_v13 = vpop.permute.xlu0 %782 }
 0x2af   : >> { %794 = vrot.lane.b32.xlu1 %v785_v12, %s1783_s22  ;;  %791 = vrot.lane.b32.xlu0 %v783_v13, %s1783_s22 }
 0x2b3   : >> { %854 = vrot.lane.b32.xlu0 %v846_v14, %s1784_s14  ;;  %820 = vrot.lane.b32.xlu1 %v812_v15, %s1785_s15 }
 0x31d   : >> { %v798_v16 = vpop.permute.xlu1 %797 }
 0x31e   : >> { %v799_v17 = vsel %vm673_vm3, %v798_v16, %v787_v11 }
 0x31f   : >> { %804 = vrot.lane.b32.xlu0 %v799_v17, %s1783_s22 }
 0x321   : >> { %v795_v18 = vpop.permute.xlu1 %794  ;;  %v792_v19 = vpop.permute.xlu0 %791 }
 0x322   : >> { %v796_v20 = vsel %vm673_vm3, %v795_v18, %v785_v12  ;;  %v793_v21 = vsel %vm673_vm3, %v792_v19, %v783_v13 }
 0x323   : >> { %802 = vrot.lane.b32.xlu0 %v796_v20, %s1783_s22  ;;  %800 = vrot.lane.b32.xlu1 %v793_v21, %s1783_s22 }
 0x325   : >> { %v855_v29 = vpop.permute.xlu0 %854  ;;  %v821_v30 = vpop.permute.xlu1 %820 }
 0x327   : >> { %818 = vrot.lane.b32.xlu0 %v811_v22, %s1785_s15  ;;  %816 = vrot.lane.b32.xlu1 %v810_v23, %s1785_s15 }
 0x32b   : >> { %852 = vrot.lane.b32.xlu0 %v845_v24, %s1784_s14  ;;  %850 = vrot.lane.b32.xlu1 %v844_v25, %s1784_s14 }
 0x32f   : >> { %677 = vrot.lane.b32.xlu0 %v1898_v0, %s1783_s22  ;;  %674 = vrot.lane.b32.xlu1 %v1912_v9, %s1783_s22 }
 0x333   : >> { %771 = vrot.lane.b32.xlu0 %v763_v26, %s1783_s22  ;;  %680 = vrot.lane.b32.xlu1 %v1906_v6, %s1783_s22 }
 0x337   : >> { %769 = vrot.lane.b32.xlu0 %v762_v27, %s1783_s22  ;;  %767 = vrot.lane.b32.xlu1 %v761_v28, %s1783_s22 }
 0x391   : >> { %v805_v31 = vpop.permute.xlu0 %804 }
 0x392   : >> { %v808_v41 = vsel %vm673_vm3, %v805_v31, %v787_v11 }
 0x393   : >> { %v861_v43 = vmul.f32 %v855_v29, %v808_v41  ;;  %v827_v51 = vmul.f32 %v821_v30, %v808_v41 }
 0x395   : >> { %v801_v32 = vpop.permute.xlu1 %800  ;;  %v803_v33 = vpop.permute.xlu0 %802 }
 0x396   : >> { %v807_v35 = vsel %vm673_vm3, %v803_v33, %v785_v12  ;;  %v806_v45 = vsel %vm673_vm3, %v801_v32, %v783_v13 }
 0x399   : >> { %v817_v34 = vpop.permute.xlu1 %816  ;;  %v819_v36 = vpop.permute.xlu0 %818 }
 0x39a   : >> { %v826_v37 = vmul.f32 %v819_v36, %v807_v35  ;;  %v825_v47 = vmul.f32 %v817_v34, %v806_v45 }
 0x39c   : >> { %833 = vrot.lane.b32.xlu0 %v826_v37, %s1784_s14 }
 0x39d   : >> { %v851_v38 = vpop.permute.xlu1 %850  ;;  %v853_v39 = vpop.permute.xlu0 %852 }
 0x39e   : >> { %v860_v40 = vmul.f32 %v853_v39, %v807_v35  ;;  %v859_v49 = vmul.f32 %v851_v38, %v806_v45 }
 0x3a0   : >> { %867 = vrot.lane.b32.xlu0 %v860_v40, %s1785_s15 }
 0x3a1   : >> { %v675_v42 = vpop.permute.xlu1 %674  ;;  %v678_v46 = vpop.permute.xlu0 %677 }
 0x3a2   : >> { %v676_v44 = vsel %vm673_vm3, %v675_v42, %v1912_v9  ;;  %v679_v48 = vsel %vm673_vm3, %v678_v46, %v1898_v0 }
 0x3a3   : >> { %683 = vrot.lane.b32.xlu1 %v676_v44, %s1783_s22  ;;  %v661_v44 = vadd.f32 %v1908_v7, %v1896_v62 }
 0x3a4   : >> { %869 = vrot.lane.b32.xlu0 %v861_v43, %s1785_s15 }
 0x3a5   : >> { %v681_v53 = vpop.permute.xlu1 %680  ;;  %v772_v59 = vpop.permute.xlu0 %771 }
 0x3a6   : >> { %v682_v55 = vsel %vm673_vm3, %v681_v53, %v1906_v6  ;;  %v778_v17 = vmul.f32 %v772_v59, %v1906_v6 }
 0x3a7   : >> { %831 = vrot.lane.b32.xlu1 %v825_v47, %s1784_s14 }
 0x3a8   : >> { %685 = vrot.lane.b32.xlu0 %v679_v48, %s1783_s22 }
 0x3a9   : >> { %v770_v60 = vpop.permute.xlu0 %769  ;;  %v768_v63 = vpop.permute.xlu1 %767 }
 0x3aa   : >> { %v776_v8 = vmul.f32 %v768_v63, %v1912_v9  ;;  %v777_v10 = vmul.f32 %v770_v60, %v1898_v0 }
 0x3ab   : >> { %865 = vrot.lane.b32.xlu1 %v859_v49, %s1785_s15 }
 0x3ac   : >> { %699 = vrot.lane.b32.xlu0 %v693_v50, %s1785_s15 }
 0x3af   : >> { %835 = vrot.lane.b32.xlu1 %v827_v51, %s1784_s14  ;;  %v2014_v51 = vpack.c.bf16 %v661_v44, %v661_v44 }
 0x3b0   : >> { %703 = vrot.lane.b32.xlu0 %v695_v52, %s1785_s15 }
 0x3b3   : >> { %687 = vrot.lane.b32.xlu1 %v682_v55, %s1783_s22 }
 0x3b4   : >> { %735 = vrot.lane.b32.xlu0 %v728_v54, %s1784_s14 }
 0x3b7   : >> { %701 = vrot.lane.b32.xlu1 %v694_v56, %s1785_s15  ;;  %s666_s15 = scalar_lea.vmem %s2131_s6, %s1918_s23  ;;  %s1788_s23 = smov 32  }
 0x3b8   : >> { %v667_v45 = vld [vmem:[%s666_s15] sm:$0xff]  ;;  %v668_v46 = vld [vmem:[%s666_s15 + $0x8] sm:$0xff]  ;;  %v669_v47 = vld [vmem:[%s666_s15 + $0x10] sm:$0x3] }
 0x3b9   : >> { %v670_v48 = vmul.f32 %v667_v45, %v1912_v9  ;;  %v671_v52 = vmul.f32 %v668_v46, %v1898_v0  ;;  %v672_v53 = vmul.f32 %v669_v47, %v1906_v6 }
 0x3bb   : >> { %733 = vrot.lane.b32.xlu1 %v727_v57, %s1784_s14 }
 0x3bf   : >> { %737 = vrot.lane.b32.xlu1 %v729_v58, %s1784_s14 }
 0x40e   : >> { %v834_v61 = vpop.permute.xlu0 %833 }
 0x40f   : >> { %v841_v11 = vadd.f32 %v834_v61, %v777_v10 }
 0x412   : >> { %v868_v1 = vpop.permute.xlu0 %867 }
 0x413   : >> { %v875_v15 = vadd.f32 %v868_v1, %v841_v11 }
 0x415   : >> { %v684_v2 = vpop.permute.xlu1 %683 }
 0x416   : >> { %v870_v3 = vpop.permute.xlu0 %869  ;;  %v689_v25 = vsel %vm673_vm3, %v684_v2, %v1912_v9 }
 0x419   : >> { %v832_v4 = vpop.permute.xlu1 %831 }
 0x41a   : >> { %v840_v12 = vadd.f32 %v832_v4, %v776_v8  ;;  %v686_v13 = vpop.permute.xlu0 %685 }
 0x41b   : >> { %v690_v27 = vsel %vm673_vm3, %v686_v13, %v1898_v0  ;;  %v989_v0 = vsel %vm987_vm5, %v2014_v51, 0 }
 0x41d   : >> { %v866_v14 = vpop.permute.xlu1 %865 }
 0x41e   : >> { %v874_v16 = vadd.f32 %v866_v14, %v840_v12  ;;  %v700_v21 = vpop.permute.xlu0 %699 }
 0x41f   : >> { %v708_v29 = vmul.f32 %v700_v21, %v689_v25 }
 0x420   : >> { %v1990_v18 = vpack.c.bf16 %v875_v15, %v874_v16 }
 0x421   : >> { %v836_v19 = vpop.permute.xlu1 %835 }
 0x422   : >> { %v842_v20 = vadd.f32 %v836_v19, %v778_v17  ;;  %885 = vrot.lane.b32.xlu1 %v1990_v18, %s1783_s22  ;;  %v704_v26 = vpop.permute.xlu0 %703 }
 0x424   : >> { %v876_v22 = vadd.f32 %v870_v3, %v842_v20 }
 0x425   : >> { %v688_v23 = vpop.permute.xlu1 %687 }
 0x426   : >> { %v1994_v24 = vpack.c.bf16 %v876_v22, %v876_v22  ;;  %v691_v31 = vsel %vm673_vm3, %v688_v23, %v1906_v6  ;;  %v736_v35 = vpop.permute.xlu0 %735 }
 0x427   : >> { %v710_v33 = vmul.f32 %v704_v26, %v691_v31  ;;  %v743_v37 = vmul.f32 %v736_v35, %v690_v27 }
 0x428   : >> { %887 = vrot.lane.b32.xlu0 %v1994_v24, %s1783_s22  ;;  %s1787_s22 = smov 65  }
 0x429   : >> { %v702_v28 = vpop.permute.xlu1 %701 }
 0x42a   : >> { %v709_v30 = vmul.f32 %v702_v28, %v690_v27 }
 0x42c   : >> { %716 = vrot.lane.b32.xlu1 %v709_v30, %s1786_s28  ;;  %714 = vrot.lane.b32.xlu0 %v708_v29, %s1786_s28 }
 0x42d   : >> { %v734_v32 = vpop.permute.xlu1 %733 }
 0x42e   : >> { %v742_v34 = vmul.f32 %v734_v32, %v689_v25 }
 0x430   : >> { %748 = vrot.lane.b32.xlu1 %v742_v34, %s1787_s22  ;;  %718 = vrot.lane.b32.xlu0 %v710_v33, %s1786_s28 }
 0x431   : >> { %v738_v36 = vpop.permute.xlu1 %737 }
 0x432   : >> { %v744_v38 = vmul.f32 %v738_v36, %v691_v31 }
 0x434   : >> { %752 = vrot.lane.b32.xlu1 %v744_v38, %s1787_s22  ;;  %750 = vrot.lane.b32.xlu0 %v743_v37, %s1787_s22 }
 0x494   : >> { %v886_v39 = vpop.permute.xlu1 %885 }
 0x495   : >> { %v897_v54 = vsel %vm889_vm4, %v886_v39, 0 }
 0x49a   : >> { %v888_v40 = vpop.permute.xlu0 %887 }
 0x49b   : >> { %1664 = vmatprep.subr.msk.bf16.mxu1 %vm889_vm4, %v888_v40  ;;  %v900_v41 = vsel %vm889_vm4, %v888_v40, 0 }
 0x49c   : >> { %1621 = vmatpush3.bf16.xpose.msra.mxu1 %v900_v41 }
 0x49d   : >> { %1665 = vmatprep.subr.msk.bf16.mxu1 %vm889_vm4, %v886_v39 }
 0x49e   : >> { %v717_v42 = vpop.permute.xlu1 %716  ;;  %v715_v43 = vpop.permute.xlu0 %714 }
 0x49f   : >> { %v724_v55 = vadd.f32 %v717_v42, %v671_v52  ;;  %v723_v56 = vadd.f32 %v715_v43, %v670_v48 }
 0x4a2   : >> { %v749_v49 = vpop.permute.xlu1 %748  ;;  %v719_v50 = vpop.permute.xlu0 %718 }
 0x4a3   : >> { %v725_v62 = vadd.f32 %v719_v50, %v672_v53  ;;  %v757_v57 = vadd.f32 %v749_v49, %v723_v56 }
 0x4a4   : >> { %1623 = vmatpush3.bf16.xpose.msra.mxu1 %v897_v54 }
 0x4a5   : >> { %1666 = vmatprep.subr.msk.bf16.mxu1 %vm987_vm5, %v2014_v51 }
 0x4a6   : >> { %v753_v7 = vpop.permute.xlu1 %752  ;;  %v751_v9 = vpop.permute.xlu0 %750 }
 0x4a7   : >> { %v759_v58 = vadd.f32 %v753_v7, %v725_v62  ;;  %v758_v59 = vadd.f32 %v751_v9, %v724_v55 }
 0x4a9   : >> { %v878_v60 = vpack.c.bf16 %v759_v58, %v759_v58  ;;  %v877_v61 = vpack.c.bf16 %v758_v59, %v757_v57 }
 0x4ab   : >> { %1624 = vmatprep.mubr.msk.bf16.mxu1 %vm889_vm4, %v877_v61 }
 0x4ac   : >> { %1625 = vmatmul.mubr.msk.bf16.vlgmr.msra.gmra.mxu1 %vm889_vm4, %v878_v60 }
 0x4ad   : >> { %1629 = vmatpush3.bf16.msra.mxu1 %v989_v0 }
 0x4ae   : >> { %1630 = vmatprep.subr.bf16.mxu1 %v1904_v5 }
 0x4b1   : >> { %1631 = vmatpush3.bf16.msra.mxu1 %v1904_v5 }
 0x56c   : >> { %v1626_v6 = vpop.f32.mrf.mxu1 }
 0x56d   : >> { %v958_v4 = vsel %vm957_vm7, %v1626_v6, -inf }
 0x56e   : >> { %v936_v63 = vpop.f32.mrf.mxu1 }
 0x56f   : >> { %v951_v1 = vsel %vm950_vm6, %v936_v63, -inf }
 0x570   : >> { %952 = vmax.xlane.f32.xlu0 %v951_v1  ;;  %v1627_v2 = vpop.f32.mrf.mxu1  ;;  %v1731_v1 = vld [vmem:[%s1277_s20 + $0x8] sm:$0xff]  }
 0x571   : >> { %v1732_v2 = vld [vmem:[%s1277_s20] sm:$0xff]  }
 0x572   : >> { %v939_v3 = vpop.f32.mrf.mxu1 }
 0x573   : >> { %v954_v8 = vsel %vm950_vm6, %v939_v3, -inf }
 0x574   : >> { %959 = vmax.xlane.f32.xlu0 %v958_v4  ;;  %955 = vmax.xlane.f32.xlu1 %v954_v8 }
 0x585   : >> { %1051 = vrot.lane.b32.xlu1 %v1990_v18, %s1788_s23 }
 0x589   : >> { %1047 = vrot.lane.b32.xlu1 %v877_v61, %s1789_s16  ;;  %v1730_v61 = vld [vmem:[%s1277_s20 + $0x10] sm:$0xff]  }
 0x58a   : >> { %1053 = vrot.lane.b32.xlu0 %v1994_v24, %s1788_s23 }
 0x58e   : >> { %1049 = vrot.lane.b32.xlu0 %v878_v60, %s1789_s16  ;;  %v1729_v60 = vld [vmem:[%s1277_s20 + $0x18] sm:$0xff]  }
 0x5f9   : >> { %v953_v10 = vpop.xlane.xlu0 %952 }
 0x5fa   : >> { %v961_v11 = vsub.f32 %v936_v63, %v953_v10 }
 0x5fc   : >> { %v964_v12 = vmul.f32 1.442695, %v961_v11 }
 0x5fd   : >> { %v960_v13 = vpop.xlane.xlu0 %959  ;;  %v956_v14 = vpop.xlane.xlu1 %955 }
 0x5fe   : >> { %v963_v15 = vsub.f32 %v1626_v6, %v960_v13  ;;  %v962_v16 = vsub.f32 %v939_v3, %v956_v14  ;;  %1733 = vpow2.f32 %v964_v12 }
 0x600   : >> { %v968_v17 = vmul.f32 1.442695, %v963_v15  ;;  %v966_v19 = vmul.f32 1.442695, %v962_v16 }
 0x601   : >> { %v1054_v20 = vpop.permute.xlu0 %1053  ;;  %v1052_v21 = vpop.permute.xlu1 %1051 }
 0x602   : >> { %1735 = vpow2.f32 %v968_v17  ;;  %1667 = vmatprep.subr.msk.bf16.mxu1 %vm889_vm4, %v1054_v20  ;;  %v1065_v26 = vsel %vm889_vm4, %v1054_v20, 0  ;;  %v1062_v28 = vsel %vm889_vm4, %v1052_v21, 0 }
 0x603   : >> { %1737 = vpow2.f32 %v966_v19 }
 0x605   : >> { %v1048_v27 = vpop.permute.xlu1 %1047  ;;  %v1050_v29 = vpop.permute.xlu0 %1049 }
 0x60b   : >> { %v2037_v18 = vpop.eup %1733 }
 0x60c   : >> { %v970_v58 = vsel %vm950_vm6, %v2037_v18, 0.0 }
 0x60f   : >> { %v2039_v22 = vpop.eup %1735 }
 0x610   : >> { %v1738_v23 = vpop.eup %1737  ;;  %v980_v24 = vpack.c.bf16 %v2039_v22, %v2039_v22  ;;  %v976_v59 = vsel %vm957_vm7, %v2039_v22, 0.0 }
 0x611   : >> { %v979_v25 = vpack.c.bf16 %v1738_v23, %v2037_v18  ;;  %v973_v57 = vsel %vm950_vm6, %v1738_v23, 0.0 }
 0x613   : >> { %1632 = vmatprep.mubr.msk.bf16.mxu1 %vm950_vm6, %v979_v25 }
 0x614   : >> { %1633 = vmatmul.mubr.msk.bf16.vlgmr.msra.gmra.mxu1 %vm950_vm6, %v980_v24 }
 0x615   : >> { %1637 = vmatpush3.bf16.xpose.msra.mxu1 %v1065_v26  ;;  %1640 = vmatprep.mubr.msk.bf16.mxu1 %vm889_vm4, %v1048_v27 }
 0x616   : >> { %1668 = vmatprep.subr.msk.bf16.mxu1 %vm889_vm4, %v1052_v21 }
 0x61d   : >> { %1639 = vmatpush3.bf16.xpose.msra.mxu1 %v1062_v28 }
 0x61e   : >> { %1652 = vmatprep.subr.bf16.mxu1 %v1729_v60 }
 0x624   : >> { %1641 = vmatmul.mubr.msk.bf16.vlgmr.msra.gmra.mxu1 %vm889_vm4, %v1050_v29 }
 0x625   : >> { %1653 = vmatpush3.bf16.msra.mxu1 %v1729_v60 }
 0x626   : >> { %1654 = vmatprep.subr.bf16.mxu1 %v1730_v61 }
 0x629   : >> { %1655 = vmatpush3.bf16.msra.mxu1 %v1730_v61 }
 0x62a   : >> { %1656 = vmatprep.subr.bf16.mxu1 %v1731_v1 }
 0x62d   : >> { %1657 = vmatpush3.bf16.msra.mxu1 %v1731_v1 }
 0x62e   : >> { %1658 = vmatprep.subr.bf16.mxu1 %v1732_v2 }
 0x631   : >> { %1659 = vmatpush3.bf16.msra.mxu1 %v1732_v2 }
 0x6d4   : >> { %v2051_v30 = vpop.f32.mrf.mxu1 }
 0x6d6   : >> { %v2053_v31 = vpop.f32.mrf.mxu1 }
 0x6d8   : >> { %v1635_v32 = vpop.f32.mrf.mxu1 }
 0x6da   : >> { %v2055_v33 = vpop.f32.mrf.mxu1 }
 0x6e4   : >> { %v1642_v34 = vpop.f32.mrf.mxu1 }
 0x6e5   : >> { %v1121_v35 = vsel %vm957_vm7, %v1642_v34, -inf }
 0x6e6   : >> { %1122 = vmax.xlane.f32.xlu0 %v1121_v35  ;;  %v1101_v36 = vpop.f32.mrf.mxu1 }
 0x6e7   : >> { %v1115_v37 = vsel %vm950_vm6, %v1101_v36, -inf }
 0x6e8   : >> { %1116 = vmax.xlane.f32.xlu1 %v1115_v37  ;;  %v1643_v38 = vpop.f32.mrf.mxu1 }
 0x6ea   : >> { %v1104_v39 = vpop.f32.mrf.mxu1 }
 0x6eb   : >> { %v1118_v40 = vsel %vm950_vm6, %v1104_v39, -inf }
 0x6ec   : >> { %1119 = vmax.xlane.f32.xlu0 %v1118_v40 }
 0x6f9   : >> { %1148 = vrot.lane.b32.xlu1 %v2014_v51, %s1789_s16 }
 0x702   : >> { %1146 = vrot.lane.b32.xlu0 %v1904_v5, %s1789_s16 }
 0x76f   : >> { %v1123_v41 = vpop.xlane.xlu0 %1122 }
 0x770   : >> { %v1126_v42 = vsub.f32 %v1642_v34, %v1123_v41 }
 0x771   : >> { %v1117_v43 = vpop.xlane.xlu1 %1116 }
 0x772   : >> { %v1124_v44 = vsub.f32 %v1101_v36, %v1117_v43  ;;  %v1131_v45 = vmul.f32 1.442695, %v1126_v42  ;;  %v1229_v43 = vld [vmem:[#allocation3] sm:$0xff] }
 0x774   : >> { %v1127_v46 = vmul.f32 1.442695, %v1124_v44 }
 0x775   : >> { %v1149_v47 = vpop.permute.xlu1 %1148  ;;  %v1120_v48 = vpop.xlane.xlu0 %1119 }
 0x776   : >> { %1739 = vpow2.f32 %v1127_v46  ;;  %v1158_v49 = vsel %vm987_vm5, %v1149_v47, 0  ;;  %v1125_v50 = vsub.f32 %v1104_v39, %v1120_v48  ;;  %1669 = vmatprep.subr.msk.bf16.mxu0 %vm987_vm5, %v1149_v47  ;;  %v1249_v46 = vld [vmem:[#allocation4] sm:$0xff]  ;;  %v1231_v47 = vld [vmem:[#allocation3 + $0x10] sm:$0x3] }
 0x777   : >> { %1645 = vmatpush3.bf16.msra.mxu0 %v1158_v49  ;;  %1741 = vpow2.f32 %v1131_v45 }
 0x778   : >> { %v1129_v51 = vmul.f32 1.442695, %v1125_v50 }
 0x779   : >> { %v1147_v52 = vpop.permute.xlu0 %1146 }
 0x77a   : >> { %1743 = vpow2.f32 %v1129_v51  ;;  %1646 = vmatprep.subr.bf16.mxu0 %v1147_v52 }
 0x77b   : >> { %1647 = vmatpush3.bf16.msra.mxu0 %v1147_v52  ;;  %v1251_v52 = vld [vmem:[#allocation4 + $0x10] sm:$0x3] }
 0x783   : >> { %v1740_v5 = vpop.eup %1739 }
 0x784   : >> { %v1133_v53 = vsel %vm950_vm6, %v1740_v5, 0.0  ;;  %v1742_v54 = vpop.eup %1741 }
 0x785   : >> { %1134 = vadd.xlane.f32.xlu1 %v1133_v53  ;;  %v1139_v56 = vsel %vm957_vm7, %v1742_v54, 0.0  ;;  %v1143_v9 = vpack.c.bf16 %v1742_v54, %v1742_v54 }
 0x787   : >> { %v1744_v55 = vpop.eup %1743 }
 0x788   : >> { %v1136_v62 = vsel %vm950_vm6, %v1744_v55, 0.0  ;;  %v1142_v7 = vpack.c.bf16 %v1744_v55, %v1740_v5  ;;  %v1230_v5 = vld [vmem:[#allocation3 + $0x8] sm:$0xff] }
 0x789   : >> { %1140 = vadd.xlane.f32.xlu1 %v1139_v56  ;;  %1137 = vadd.xlane.f32.xlu0 %v1136_v62  ;;  %v1250_v62 = vld [vmem:[#allocation4 + $0x8] sm:$0xff] }
 0x78a   : >> { %1648 = vmatprep.mubr.msk.bf16.mxu0 %vm950_vm6, %v1142_v7 }
 0x78b   : >> { %1649 = vmatmul.mubr.msk.bf16.vlgmr.msra.gmra.mxu0 %vm950_vm6, %v1143_v9 }
 0x78d   : >> { %974 = vadd.xlane.f32.xlu1 %v973_v57  ;;  %971 = vadd.xlane.f32.xlu0 %v970_v58  ;;  %v1272_v57 = vld [vmem:[%s1876_s29 + $0x10] sm:$0x3] }
 0x791   : >> { %977 = vadd.xlane.f32.xlu0 %v976_v59  ;;  %v1270_v59 = vld [vmem:[%s1876_s29] sm:$0xff] }
 0x80e   : >> { %v1135_v0 = vpop.xlane.xlu1 %1134 }
 0x80f   : >> { %1745 = vrcp.f32 %v1135_v0 }
 0x812   : >> { %v1141_v6 = vpop.xlane.xlu1 %1140  ;;  %v1138_v63 = vpop.xlane.xlu0 %1137 }
 0x813   : >> { %1747 = vrcp.f32 %v1141_v6 }
 0x814   : >> { %1749 = vrcp.f32 %v1138_v63  ;;  %v1271_v63 = vld [vmem:[%s1876_s29 + $0x8] sm:$0xff] }
 0x816   : >> { %v972_v17 = vpop.xlane.xlu0 %971  ;;  %v975_v19 = vpop.xlane.xlu1 %974 }
 0x817   : >> { %1751 = vrcp.f32 %v972_v17 }
 0x818   : >> { %1753 = vrcp.f32 %v975_v19 }
 0x81a   : >> { %v978_v20 = vpop.xlane.xlu0 %977 }
 0x81b   : >> { %1755 = vrcp.f32 %v978_v20 }
 0x81c   : >> { %v1746_v4 = vpop.eup %1745 }
 0x820   : >> { %v1748_v12 = vpop.eup %1747 }
 0x821   : >> { %v1750_v13 = vpop.eup %1749 }
 0x824   : >> { %v1752_v18 = vpop.eup %1751 }
 0x825   : >> { %v1754_v21 = vpop.eup %1753  ;;  %v1042_v22 = vmul.f32 %v1752_v18, %v2053_v31 }
 0x826   : >> { %v1043_v29 = vmul.f32 %v1754_v21, %v2055_v33 }
 0x828   : >> { %v1756_v23 = vpop.eup %1755 }
 0x829   : >> { %v1044_v28 = vmul.f32 %v1756_v23, %v2051_v30 }
 0x84b   : >> { %v1650_v3 = vpop.f32.mrf.mxu0 }
 0x84c   : >> { %v1213_v15 = vmul.f32 %v1748_v12, %v1650_v3 }
 0x84d   : >> { %v1194_v8 = vpop.f32.mrf.mxu0 }
 0x84e   : >> { %v1211_v10 = vmul.f32 %v1746_v4, %v1194_v8 }
 0x84f   : >> { %v1651_v11 = vpop.f32.mrf.mxu0 }
 0x850   : >> { %1217 = vrot.lane.b32.xlu1 %v1211_v10, %s1788_s23  ;;  %v1790_v10 = vmov (%p484_p4), 0  }
 0x851   : >> { %v1197_v14 = vpop.f32.mrf.mxu0  ;;  %1758 = vset.pattern.permute.xlu1 (%p484_p4), %v1790_v10  ;;  %1757 = vset.pattern.permute.xlu0 (%p484_p4), %v1790_v10 }
 0x852   : >> { %v1212_v16 = vmul.f32 %v1750_v13, %v1197_v14 }
 0x854   : >> { %1221 = vrot.lane.b32.xlu1 %v1213_v15, %s1788_s23  ;;  %1219 = vrot.lane.b32.xlu0 %v1212_v16, %s1788_s23 }
 0x8c2   : >> { %v1218_v24 = vpop.permute.xlu1 %1217 }
 0x8c3   : >> { %v1226_v25 = vsel %vm889_vm4, %v1042_v22, %v1218_v24 }
 0x8c4   : >> { %v1233_v26 = vsel %vm1232_vm8, %v1226_v25, 0.0  ;;  %v1252_v27 = vmul.f32 %v1226_v25, %v1226_v25 }
 0x8c5   : >> { %1234 = vadd.xlane.f32.xlu1 %v1233_v26 }
 0x8c6   : >> { %v1222_v32 = vpop.permute.xlu1 %1221  ;;  %v1220_v34 = vpop.permute.xlu0 %1219  ;;  %v1255_v36 = vsel %vm1232_vm8, %v1252_v27, 0.0 }
 0x8c7   : >> { %v1228_v35 = vsel %vm889_vm4, %v1044_v28, %v1222_v32  ;;  %v1227_v31 = vsel %vm889_vm4, %v1043_v29, %v1220_v34 }
 0x8c8   : >> { %v1274_v37 = vpack.c.bf16 %v1228_v35, %v1228_v35  ;;  %v1273_v38 = vpack.c.bf16 %v1227_v31, %v1226_v25  ;;  %v1240_v39 = vsel %vm1239_vm9, %v1228_v35, 0.0  ;;  %v1254_v40 = vmul.f32 %v1228_v35, %v1228_v35 }
 0x8c9   : >> { %1256 = vadd.xlane.f32.xlu1 %v1255_v36  ;;  %1241 = vadd.xlane.f32.xlu0 %v1240_v39  ;;  %v1236_v33 = vsel %vm1232_vm8, %v1227_v31, 0.0  ;;  %v1253_v41 = vmul.f32 %v1227_v31, %v1227_v31 }
 0x8ca   : >> { %1660 = vmatprep.mubr.msk.bf16.mxu1 %vm1232_vm8, %v1273_v38  ;;  %v1261_v30 = vsel %vm1239_vm9, %v1254_v40, 0.0  ;;  %v1584_v40 = vld [vmem:[%s2129_s4] ss:$0 sm:$0xff] (%p484_p4) }
 0x8cb   : >> { %1661 = vmatmul.mubr.msk.bf16.vlgmr.msra.gmra.mxu1 %vm1232_vm8, %v1274_v37  ;;  %v1258_v42 = vsel %vm1232_vm8, %v1253_v41, 0.0 }
 0x8cd   : >> { %1262 = vadd.xlane.f32.xlu1 %v1261_v30  ;;  %1237 = vadd.xlane.f32.xlu0 %v1236_v33 }
 0x8d1   : >> { %1259 = vadd.xlane.f32.xlu0 %v1258_v42 }
 0x94e   : >> { %v1235_v44 = vpop.xlane.xlu1 %1234 }
 0x94f   : >> { %v1243_v45 = vadd.f32 %v1235_v44, %v1229_v43  ;;  %v1585_v44 = vld [vmem:[%s2130_s5] ss:$0 sm:$0xff] (%p484_p4) }
 0x951   : >> { %1246 = vst.msk [vmem:[#allocation3] sm:$0xff] %vm474_vm0, %v1243_v45 }
 0x952   : >> { %v1257_v48 = vpop.xlane.xlu1 %1256  ;;  %v1242_v49 = vpop.xlane.xlu0 %1241 }
 0x953   : >> { %v1264_v50 = vadd.f32 %v1257_v48, %v1249_v46  ;;  %v1245_v51 = vadd.f32 %v1242_v49, %v1231_v47 }
 0x955   : >> { %1267 = vst.msk [vmem:[#allocation4] sm:$0xff] %vm474_vm0, %v1264_v50 }
 0x956   : >> { %1248 = vst.msk [vmem:[#allocation3 + $0x10] sm:$0x3] %vm477_vm1, %v1245_v51  ;;  %v1263_v53 = vpop.xlane.xlu1 %1262  ;;  %v1238_v54 = vpop.xlane.xlu0 %1237 }
 0x957   : >> { %v1266_v55 = vadd.f32 %v1263_v53, %v1251_v52  ;;  %v1244_v56 = vadd.f32 %v1238_v54, %v1230_v5 }
 0x958   : > { %v1370_v8 = vld [vmem:[#allocation3] sm:$0xff] (%p484_p4) }
 0x959   : >> { %1269 = vst.msk [vmem:[#allocation4 + $0x10] sm:$0x3] %vm477_vm1, %v1266_v55  ;;  %v1373_v13 = vmul.f32 (%p484_p4), 0.0078125, %v1370_v8 }
 0x95a   : >> { %1247 = vst.msk [vmem:[#allocation3 + $0x8] sm:$0xff] %vm474_vm0, %v1244_v56  ;;  %v1260_v7 = vpop.xlane.xlu0 %1259 }
 0x95b   : >> { %v1265_v9 = vadd.f32 %v1260_v7, %v1250_v62  ;;  %v1382_v21 = vmul.f32 (%p484_p4), %v1373_v13, %v1373_v13 }
 0x95c   : > { %v1376_v14 = vld [vmem:[#allocation4] sm:$0xff] (%p484_p4) }
 0x95d   : >> { %1268 = vst.msk [vmem:[#allocation4 + $0x8] sm:$0xff] %vm474_vm0, %v1265_v9  ;;  %v1372_v3 = vld [vmem:[#allocation3 + $0x10] sm:$0x3] (%p484_p4)  ;;  %v1379_v17 = vmul.f32 (%p484_p4), 0.0078125, %v1376_v14 }
 0x95e   : > { %v1375_v11 = vmul.f32 (%p484_p4), 0.0078125, %v1372_v3 }
 0x95f   : > { %v1385_v24 = vsub.f32 (%p484_p4), %v1379_v17, %v1382_v21 }
 0x960   : > { %v1378_v4 = vld [vmem:[#allocation4 + $0x10] sm:$0x3] (%p484_p4)  ;;  %v1384_v18 = vmul.f32 (%p484_p4), %v1375_v11, %v1375_v11 }
 0x961   : > { %v1381_v12 = vmul.f32 (%p484_p4), 0.0078125, %v1378_v4  ;;  %v1371_v15 = vld [vmem:[#allocation3 + $0x8] sm:$0xff] (%p484_p4)  ;;  %v1388_v27 = vadd.f32 (%p484_p4), 1e-05, %v1385_v24 }
 0x962   : > { %v1374_v19 = vmul.f32 (%p484_p4), 0.0078125, %v1371_v15 }
 0x963   : > { %v1387_v23 = vsub.f32 (%p484_p4), %v1381_v12, %v1384_v18 }
 0x964   : > { %v1377_v16 = vld [vmem:[#allocation4 + $0x8] sm:$0xff] (%p484_p4)  ;;  %v1383_v22 = vmul.f32 (%p484_p4), %v1374_v19, %v1374_v19 }
 0x965   : > { %v1380_v20 = vmul.f32 (%p484_p4), 0.0078125, %v1377_v16  ;;  %v1390_v26 = vadd.f32 (%p484_p4), 1e-05, %v1387_v23 }
 0x967   : > { %v1386_v25 = vsub.f32 (%p484_p4), %v1380_v20, %v1383_v22  ;;  %1759 = vrsqrt.f32 (%p484_p4), %v1390_v26 }
 0x968   : > { %1761 = vrsqrt.f32 (%p484_p4), %v1388_v27 }
 0x969   : > { %v1389_v28 = vadd.f32 (%p484_p4), 1e-05, %v1386_v25 }
 0x96b   : > { %1763 = vrsqrt.f32 (%p484_p4), %v1389_v28 }
 0x974   : > { %v1760_v29 = vpop.eup (%p484_p4), %1759 }
 0x975   : > { %v1762_v32 = vpop.eup (%p484_p4), %1761  ;;  %1409 = vperm.xlu1 (%p484_p4), %1758, %v1760_v29   ;;  %v1417_v31 = vmul.f32 (%p484_p4), %v1760_v29, %v1375_v11 }
 0x976   : > { %1399 = vperm.xlu0 (%p484_p4), %1757, %v1762_v32   ;;  %v1415_v34 = vmul.f32 (%p484_p4), %v1762_v32, %v1373_v13 }
 0x978   : > { %v1764_v35 = vpop.eup (%p484_p4), %1763 }
 0x979   : > { %1421 = vperm.xlu1 (%p484_p4), %1758, %v1415_v34   ;;  %v1416_v36 = vmul.f32 (%p484_p4), %v1764_v35, %v1374_v19 }
 0x97a   : > { %1404 = vperm.xlu0 (%p484_p4), %1757, %v1764_v35  }
 0x97d   : > { %1431 = vperm.xlu1 (%p484_p4), %1758, %v1417_v31  }
 0x97e   : > { %1426 = vperm.xlu0 (%p484_p4), %1757, %v1416_v36  }
 0x98b   : >> { %v1662_v58 = vpop.f32.mrf.mxu1 }
 0x98c   : >> { %v1366_v60 = vadd.f32 %v1662_v58, %v1272_v57 }
 0x98d   : >> { %v1350_v61 = vpop.f32.mrf.mxu1 }
 0x98e   : >> { %1369 = vst [vmem:[%s1876_s29 + $0x10] sm:$0x3] %v1366_v60  ;;  %v1364_v0 = vadd.f32 %v1350_v61, %v1270_v59 }
 0x98f   : >> { %v1663_v6 = vpop.f32.mrf.mxu1 }
 0x990   : >> { %1367 = vst [vmem:[%s1876_s29] sm:$0xff] %v1364_v0  ;;  %486 = sbr.rel (!%p484_p4) target bundleno = 330 (0x14a), region = 114 }
 0x991   : >> { %v1353_v1 = vpop.f32.mrf.mxu1 }
 0x992   : >> { %v1365_v2 = vadd.f32 %v1353_v1, %v1271_v63 }
 0x994   : >> { %1368 = vst [vmem:[%s1876_s29 + $0x8] sm:$0xff] %v1365_v2 }
 0x995   : > { %v1396_v43 = vld [vmem:[%s1876_s29 + $0x10] sm:$0x3] }
 0x997   : > { %v1394_v39 = vld [vmem:[%s1876_s29] sm:$0xff] }
 0x99b   : > { %v1395_v45 = vld [vmem:[%s1876_s29 + $0x8] sm:$0xff] }
 0x9f0   : > { %v1410_v37 = vpop.permute.xlu1 %1409 }
 0x9f1   : > { %v1400_v38 = vpop.permute.xlu0 %1399  ;;  %v1414_v48 = vmul.f32 %v1410_v37, %v1396_v43 }
 0x9f2   : > { %v1412_v33 = vmul.f32 %v1400_v38, %v1394_v39 }
 0x9f4   : > { %v1422_v30 = vpop.permute.xlu1 %1421 }
 0x9f5   : > { %v1405_v41 = vpop.permute.xlu0 %1404  ;;  %v1440_v42 = vmul.f32 %v1584_v40, %v1422_v30 }
 0x9f6   : > { %v1413_v52 = vmul.f32 %v1405_v41, %v1395_v45 }
 0x9f7   : > { %v1443_v46 = vsub.f32 %v1412_v33, %v1440_v42 }
 0x9f8   : > { %v1432_v47 = vpop.permute.xlu1 %1431 }
 0x9f9   : > { %v1453_v49 = vadd.f32 %v1585_v44, %v1443_v46  ;;  %v1427_v50 = vpop.permute.xlu0 %1426  ;;  %v1442_v51 = vmul.f32 %v1584_v40, %v1432_v47 }
 0x9fa   : > { %v1441_v5 = vmul.f32 %v1584_v40, %v1427_v50 }
 0x9fb   : > { %1456 = vst [vmem:[%s1876_s29] sm:$0xff] %v1453_v49  ;;  %v1445_v53 = vsub.f32 %v1414_v48, %v1442_v51 }
 0x9fc   : > { %v1444_v54 = vsub.f32 %v1413_v52, %v1441_v5 }
 0x9fd   : > { %v1455_v55 = vadd.f32 %v1585_v44, %v1445_v53 }
 0x9fe   : > { %v1454_v56 = vadd.f32 %v1585_v44, %v1444_v54 }
 0x9ff   : > { %1458 = vst [vmem:[%s1876_s29 + $0x10] sm:$0x3] %v1455_v55 }
 0xa00   : > { %1457 = vst [vmem:[%s1876_s29 + $0x8] sm:$0xff] %v1454_v56 }
 0xa01 PF: > { %s22_s21 = sadd.s32 1, %s1775_s21  }
 0xa02   : > { %p19_p5 = scmp.ge.s32.totalorder %s22_s21, 4  }
 0xa04   :  { %21 = sbr.rel (!%p19_p5) target bundleno = 1 (0x1), region = 125 }

// kernel: tpu_custom_call.1
= control target key start
LH: loop header
LB: loop body
LE: loop exit
PB: predicated region body
PF: predicated region fallthrough
CT: control target
= control target key end

     0   :  { %s1856_s21 = smov 0   ;;  %s2125_s0 = inlined_call_operand.vmem [shape: f32[2,18,128], index: 0, kind: input, shape index: {}]   ;;  %s2126_s1 = inlined_call_operand.vmem [shape: bf16[2,128,192], index: 1, kind: input, shape index: {}]   ;;  %s2127_s2 = inlined_call_operand.vmem [shape: f32[2,1,192], index: 2, kind: input, shape index: {}]   ;;  %s2128_s3 = inlined_call_operand.vmem [shape: bf16[2,64,128], index: 3, kind: input, shape index: {}]   ;;  %s2129_s4 = inlined_call_operand.vmem [shape: f32[1,128], index: 4, kind: input, shape index: {}]   ;;  %s2130_s5 = inlined_call_operand.vmem [shape: f32[1,128], index: 5, kind: input, shape index: {}]   ;;  %s2131_s6 = inlined_call_operand.vmem [shape: f32[2,18,64], index: 6, kind: input, shape index: {}]   ;;  %s2132_s7 = inlined_call_operand.vmem [shape: f32[2,18,64], index: 7, kind: input, shape index: {}]   ;;  %s2133_s8 = inlined_call_operand.vmem [shape: f32[2,18,64], index: 8, kind: input, shape index: {}]   ;;  %s2134_s9 = inlined_call_operand.vmem [shape: f32[2,18,64], index: 9, kind: input, shape index: {}]   ;;  %s2135_s10 = inlined_call_operand.vmem [shape: f32[2,18,64], index: 10, kind: input, shape index: {}]   ;;  %s2136_s11 = inlined_call_operand.vmem [shape: f32[2,18,64], index: 11, kind: input, shape index: {}]   ;;  %s2137_s12 = inlined_call_operand.vmem [shape: f32[2,18,128], index: 12, kind: output, shape index: {}]  }
   0x1 LB: > { %s1537_s22 = sadd.s32 4294967295, %s1775_s21   ;;  %p1541_p0 = scmp.ge.s32.totalorder %s1775_s21, 1  ;;  %s1775_s21 = sphi %s1856_s21, %s22_s21  }
   0x2   : > { %p362_p1 = scmp.lt.s32.totalorder %s1775_s21, 3 }
   0x4   : > { %p363_p2 = pnand %p1541_p0, %p362_p1 }
   0x5   : > { %p404_p3 = scmp.lt.s32.totalorder (!%p363_p2), %s1537_s22, 1  ;;  %s1883_s30 = smov (!%p363_p2), 0  }
   0x6   : > { %366 = sbr.rel (%p363_p2) target bundleno = 2561 (0xa01), region = 68 }
   0xb   : > { %vm474_vm0 = vcmask 7168   ;;  %vm477_vm1 = vcmask 1024   ;;  %v1781_v0 = vmov 0.0   ;;  %s2139_s22 = smov (!%p404_p3, %s1537_s22), 1  ;;  %vm422_vm2 = vcmask 1041408  }
   0xc   : > { %475 = vst.msk [vmem:[#allocation3] sm:$0xff] %vm474_vm0, %v1781_v0  ;;  %476 = vst.msk [vmem:[#allocation3 + $0x8] sm:$0xff] %vm474_vm0, %v1781_v0  ;;  %s1670_s23 = smul.u32 24, %s2139_s22 }
   0xd   : > { %478 = vst.msk [vmem:[#allocation3 + $0x10] sm:$0x3] %vm477_vm1, %v1781_v0  ;;  %481 = vst.msk [vmem:[#allocation4 + $0x10] sm:$0x3] %vm477_vm1, %v1781_v0 }
   0xe   : > { %479 = vst.msk [vmem:[#allocation4] sm:$0xff] %vm474_vm0, %v1781_v0  ;;  %480 = vst.msk [vmem:[#allocation4 + $0x8] sm:$0xff] %vm474_vm0, %v1781_v0  ;;  %s408_s26 = scalar_lea.vmem %s2125_s0, %s1670_s23  ;;  %s1876_s29 = scalar_lea.vmem %s2137_s12, %s1670_s23 }
   0xf   : > { %v416_v1 = vld [vmem:[%s408_s26 + $0x8] sm:$0xff]  ;;  %471 = vst [vmem:[%s1876_s29] sm:$0xff] %v1781_v0  ;;  %472 = vst [vmem:[%s1876_s29 + $0x8] sm:$0xff] %v1781_v0  ;;  %v417_v2 = vld [vmem:[%s408_s26 + $0x10] sm:$0x3] }
  0x10   : > { %473 = vst [vmem:[%s1876_s29 + $0x10] sm:$0x3] %v1781_v0  ;;  %420 = vadd.xlane.f32.xlu1 %v416_v1  ;;  %v423_v3 = vsel %vm422_vm2, %v417_v2, 0.0  ;;  %v415_v4 = vld [vmem:[%s408_s26] sm:$0xff] }
  0x11   : > { %424 = vadd.xlane.f32.xlu0 %v423_v3 }
  0x15   : > { %418 = vadd.xlane.f32.xlu0 %v415_v4 }
  0x99   : > { %v421_v5 = vpop.xlane.xlu1 %420 }
  0x9a   : > { %v428_v6 = vmul.f32 0.0078125, %v421_v5  ;;  %v425_v7 = vpop.xlane.xlu0 %424 }
  0x9b   : > { %v429_v9 = vmul.f32 0.0078125, %v425_v7 }
  0x9c   : > { %v431_v8 = vsub.f32 %v416_v1, %v428_v6 }
  0x9d   : > { %v432_v13 = vsub.f32 %v417_v2, %v429_v9 }
  0x9e   : > { %v419_v10 = vpop.xlane.xlu0 %418  ;;  %v434_v11 = vmul.f32 %v431_v8, %v431_v8 }
  0x9f   : > { %v427_v12 = vmul.f32 0.0078125, %v419_v10  ;;  %v435_v16 = vmul.f32 %v432_v13, %v432_v13 }
  0xa0   : > { %438 = vadd.xlane.f32.xlu0 %v434_v11 }
  0xa1   : > { %v430_v14 = vsub.f32 %v415_v4, %v427_v12  ;;  %v440_v17 = vsel %vm422_vm2, %v435_v16, 0.0 }
  0xa3   : > { %v433_v15 = vmul.f32 %v430_v14, %v430_v14 }
  0xa5   : > { %436 = vadd.xlane.f32.xlu1 %v433_v15 }
  0xa9   : > { %441 = vadd.xlane.f32.xlu1 %v440_v17 }
 0x129   : > { %v439_v18 = vpop.xlane.xlu0 %438 }
 0x12a   : > { %v444_v19 = vmul.f32 0.0078125, %v439_v18 }
 0x12c   : > { %v447_v20 = vadd.f32 1e-05, %v444_v19 }
 0x12e   : > { %v437_v21 = vpop.xlane.xlu1 %436  ;;  %1697 = vrsqrt.f32 %v447_v20 }
 0x12f   : > { %v443_v22 = vmul.f32 0.0078125, %v437_v21 }
 0x131   : > { %v446_v23 = vadd.f32 1e-05, %v443_v22 }
 0x132   : > { %v442_v24 = vpop.xlane.xlu1 %441 }
 0x133   : > { %1699 = vrsqrt.f32 %v446_v23  ;;  %v445_v25 = vmul.f32 0.0078125, %v442_v24 }
 0x135   : > { %v448_v26 = vadd.f32 1e-05, %v445_v25 }
 0x137   : > { %1701 = vrsqrt.f32 %v448_v26 }
 0x13b   : > { %v1698_v27 = vpop.eup %1697 }
 0x13c   : > { %v453_v29 = vmul.f32 %v1698_v27, %v431_v8 }
 0x140   : > { %v1700_v28 = vpop.eup %1699 }
 0x141   : > { %v452_v30 = vmul.f32 %v1700_v28, %v430_v14 }
 0x143   : > { %v1596_v31 = vpack.c.bf16 %v453_v29, %v452_v30 }
 0x144   : > { %v1702_v32 = vpop.eup %1701 }
 0x145   : > { %1597 = vst [vmem:[#allocation2] sm:$0xff] %v1596_v31   ;;  %v454_v33 = vmul.f32 %v1702_v32, %v432_v13 }
 0x147   : > { %v1590_v34 = vpack.c.bf16 %v454_v33, %v454_v33 }
 0x149   : > { %470 = vst [vmem:[#allocation2 + $0x8] sm:$0x1] %v1590_v34 }
 0x14a LB: >> { %v1782_v35 = vmov 0   ;;  %s1591_s13 = sshll.u32 %s1779_s30, 7  ;;  %v514_v54 = vlaneseq  ;;  %s1549_s17 = sshll.u32 %s1779_s30, 1  ;;  %vm673_vm3 = vcmask 1048064   ;;  %vm889_vm4 = vcmask 261120   ;;  %s1779_s30 = sphi %s1883_s30, %s487_s30  }
 0x14b   : >> { %646 = vmatprep.mubr.bf16.mxu0 %v1782_v35  ;;  %s493_s16 = scalar_lea.vmem %s2126_s1, %s1591_s13  ;;  %s511_s20 = scalar_lea.vmem %s2127_s2, %s1549_s17  ;;  %vm987_vm5 = vcmask 1040384   ;;  %vm950_vm6 = vcmask 146432   ;;  %vm957_vm7 = vcmask 140288   ;;  %vm1232_vm8 = vcmask 523264  }
 0x14c   : >> { %v1703_v36 = vld [vmem:[%s493_s16 + $0x74] ss:$8 sps:$4 sm:$0xff]   ;;  %v1705_v37 = vld [vmem:[%s493_s16 + $0x70] ss:$8 sps:$4 sm:$0xff]   ;;  %v1706_v38 = vld [vmem:[%s493_s16 + $0x64] ss:$8 sps:$4 sm:$0xff]  }
 0x14d   : >> { %614 = vmatprep.subr.bf16.mxu0 %v1703_v36  ;;  %v1708_v39 = vld [vmem:[%s493_s16 + $0x60] ss:$8 sps:$4 sm:$0xff]   ;;  %v1709_v40 = vld [vmem:[%s493_s16 + $0x54] ss:$8 sps:$4 sm:$0xff]   ;;  %v1711_v41 = vld [vmem:[%s493_s16 + $0x50] ss:$8 sps:$4 sm:$0xff]  }
 0x14e   : >> { %615 = vmatpush1.bf16.msra.mxu0 %v1705_v37  ;;  %v1712_v42 = vld [vmem:[%s493_s16 + $0x44] ss:$8 sps:$4 sm:$0xff]   ;;  %v1714_v43 = vld [vmem:[%s493_s16 + $0x40] ss:$8 sps:$4 sm:$0xff]   ;;  %v1715_v44 = vld [vmem:[%s493_s16 + $0x34] ss:$8 sps:$4 sm:$0xff]  }
 0x14f   : >> { %616 = vmatprep.subr.bf16.mxu0 %v1706_v38  ;;  %v1717_v45 = vld [vmem:[%s493_s16 + $0x30] ss:$8 sps:$4 sm:$0xff]   ;;  %v1718_v46 = vld [vmem:[%s493_s16 + $0x24] ss:$8 sps:$4 sm:$0xff]   ;;  %v1720_v47 = vld [vmem:[%s493_s16 + $0x20] ss:$8 sps:$4 sm:$0xff]  }
 0x150   : >> { %v1721_v48 = vld [vmem:[%s493_s16 + $0x14] ss:$8 sps:$4 sm:$0xff]   ;;  %v1723_v49 = vld [vmem:[%s493_s16 + $0x10] ss:$8 sps:$4 sm:$0xff]   ;;  %v1724_v50 = vld [vmem:[%s493_s16 + $0x4] ss:$8 sps:$4 sm:$0xff]  }
 0x151   : >> { %v1726_v51 = vld [vmem:[%s493_s16] ss:$8 sps:$4 sm:$0xff]   ;;  %v515_v55 = vshrl.u32 %v514_v54, 7  ;;  %s1783_s22 = smov 64   ;;  %s1918_s23 = smul.u32 24, %s1779_s30  ;;  %vm1239_vm9 = vcmask 517120  }
 0x152   : >> { %617 = vmatpush1.bf16.msra.mxu0 %v1708_v39  ;;  %v1727_v52 = vld [vmem:[#allocation2] sm:$0xff]   ;;  %v1728_v53 = vld [vmem:[#allocation2 + $0x8] ss:$0 sps:$4 sm:$0x11]   ;;  %s1784_s14 = smov 63   ;;  %s1785_s15 = smov 1  }
 0x153   : >> { %618 = vmatprep.subr.bf16.mxu0 %v1709_v40  ;;  %v516_v56 = vsub.s32 0, %v515_v55  ;;  %v520_v57 = vsub.s32 1, %v515_v55  ;;  %v512_v58 = vld [vmem:[%s511_s20] sm:$0x3]  ;;  %s843_s26 = scalar_lea.vmem %s2136_s11, %s1918_s23  ;;  %s809_s13 = scalar_lea.vmem %s2135_s10, %s1918_s23 }
 0x154   : >> { %v846_v14 = vld [vmem:[%s843_s26 + $0x10] sm:$0x3]  ;;  %v811_v22 = vld [vmem:[%s809_s13 + $0x8] sm:$0xff]  ;;  %v810_v23 = vld [vmem:[%s809_s13] sm:$0xff]  ;;  %s760_s18 = scalar_lea.vmem %s2134_s9, %s1918_s23  ;;  %s692_s24 = scalar_lea.vmem %s2132_s7, %s1918_s23 }
 0x155   : >> { %v517_v61 = vrot.slane %v512_v58, %v516_v56  ;;  %v1896_v62 = vrot.slane %v512_v58, %v520_v57  ;;  %v812_v15 = vld [vmem:[%s809_s13 + $0x10] sm:$0x3]  ;;  %v845_v24 = vld [vmem:[%s843_s26 + $0x8] sm:$0xff]  ;;  %v844_v25 = vld [vmem:[%s843_s26] sm:$0xff]  ;;  %s726_s27 = scalar_lea.vmem %s2133_s8, %s1918_s23  ;;  %s1786_s28 = smov 127  }
 0x156   : >> { %619 = vmatpush1.bf16.msra.mxu0 %v1711_v41  ;;  %v763_v26 = vld [vmem:[%s760_s18 + $0x10] sm:$0x3]  ;;  %v762_v27 = vld [vmem:[%s760_s18 + $0x8] sm:$0xff]  ;;  %v761_v28 = vld [vmem:[%s760_s18] sm:$0xff]  ;;  %s1789_s16 = smov 96   ;;  %s1592_s17 = sshll.u32 %s1779_s30, 5 }
 0x157   : >> { %620 = vmatprep.subr.bf16.mxu0 %v1712_v42  ;;  %v728_v54 = vld [vmem:[%s726_s27 + $0x8] sm:$0xff]  ;;  %v727_v57 = vld [vmem:[%s726_s27] sm:$0xff]  ;;  %v729_v58 = vld [vmem:[%s726_s27 + $0x10] sm:$0x3]  ;;  %s1277_s20 = scalar_lea.vmem %s2128_s3, %s1592_s17  ;;  %s487_s30 = sadd.s32 1, %s1779_s30  }
 0x158   : >> { %v694_v56 = vld [vmem:[%s692_s24 + $0x8] sm:$0xff]  ;;  %p484_p4 = scmp.ge.s32.totalorder %s487_s30, 2  }
 0x15a   : >> { %621 = vmatpush1.bf16.msra.mxu0 %v1714_v43 }
 0x15b   : >> { %622 = vmatprep.subr.bf16.mxu0 %v1715_v44 }
 0x15e   : >> { %623 = vmatpush1.bf16.msra.mxu0 %v1717_v45 }
 0x15f   : >> { %624 = vmatprep.subr.bf16.mxu0 %v1718_v46 }
 0x162   : >> { %625 = vmatpush1.bf16.msra.mxu0 %v1720_v47 }
 0x163   : >> { %626 = vmatprep.subr.bf16.mxu0 %v1721_v48 }
 0x166   : >> { %627 = vmatpush1.bf16.msra.mxu0 %v1723_v49 }
 0x167   : >> { %628 = vmatprep.subr.bf16.mxu0 %v1724_v50  ;;  %v693_v50 = vld [vmem:[%s692_s24] sm:$0xff] }
 0x16a   : >> { %629 = vmatpush1.bf16.msra.mxu0 %v1726_v51 }
 0x16d   : >> { %647 = vmatmul.mubr.bf16.vlgmr.msra.gmra.mxu0 %v1727_v52  ;;  %v695_v52 = vld [vmem:[%s692_s24 + $0x10] sm:$0x3] }
 0x16e   : >> { %656 = vmatprep.mubr.bf16.mxu0 %v1782_v35 }
 0x175   : >> { %657 = vmatmul.mubr.bf16.gmra.mxu0 %v1728_v53 }
 0x22d   : >> { %v648_v59 = vpop.f32.mrf.mxu0 }
 0x22e   : >> { %v1912_v9 = vadd.f32 %v648_v59, %v517_v61 }
 0x22f   : >> { %v650_v60 = vpop.f32.mrf.mxu0 }
 0x230   : >> { %v651_v2 = vadd.f32 %v650_v60, %v1896_v62 }
 0x231   : >> { %v652_v63 = vpop.f32.mrf.mxu0 }
 0x232   : >> { %v1898_v0 = vadd.f32 %v652_v63, %v517_v61 }
 0x233   : >> { %v654_v1 = vpop.f32.mrf.mxu0 }
 0x234   : >> { %v655_v3 = vadd.f32 %v654_v1, %v1896_v62  ;;  %784 = vrot.lane.b32.xlu1 %v1898_v0, %s1783_s22 }
 0x235   : >> { %v658_v4 = vpop.f32.mrf.mxu0 }
 0x236   : >> { %v1904_v5 = vpack.c.bf16 %v655_v3, %v651_v2  ;;  %v1906_v6 = vadd.f32 %v658_v4, %v517_v61 }
 0x237   : >> { %v1908_v7 = vpop.f32.mrf.mxu0 }
 0x238   : >> { %786 = vrot.lane.b32.xlu0 %v1906_v6, %s1783_s22 }
 0x239   : >> { %v662_v8 = vpop.f32.mrf.mxu0 }
 0x23b   : >> { %v663_v10 = vpop.f32.mrf.mxu0 }
 0x23c   : >> { %782 = vrot.lane.b32.xlu0 %v1912_v9, %s1783_s22 }
 0x2a6   : >> { %v785_v12 = vpop.permute.xlu1 %784 }
 0x2aa   : >> { %v787_v11 = vpop.permute.xlu0 %786 }
 0x2ab   : >> { %797 = vrot.lane.b32.xlu1 %v787_v11, %s1783_s22 }
 0x2ae   : >> { %v783_v13 = vpop.permute.xlu0 %782 }
 0x2af   : >> { %794 = vrot.lane.b32.xlu1 %v785_v12, %s1783_s22  ;;  %791 = vrot.lane.b32.xlu0 %v783_v13, %s1783_s22 }
 0x2b3   : >> { %854 = vrot.lane.b32.xlu0 %v846_v14, %s1784_s14  ;;  %820 = vrot.lane.b32.xlu1 %v812_v15, %s1785_s15 }
 0x31d   : >> { %v798_v16 = vpop.permute.xlu1 %797 }
 0x31e   : >> { %v799_v17 = vsel %vm673_vm3, %v798_v16, %v787_v11 }
 0x31f   : >> { %804 = vrot.lane.b32.xlu0 %v799_v17, %s1783_s22 }
 0x321   : >> { %v795_v18 = vpop.permute.xlu1 %794  ;;  %v792_v19 = vpop.permute.xlu0 %791 }
 0x322   : >> { %v796_v20 = vsel %vm673_vm3, %v795_v18, %v785_v12  ;;  %v793_v21 = vsel %vm673_vm3, %v792_v19, %v783_v13 }
 0x323   : >> { %802 = vrot.lane.b32.xlu0 %v796_v20, %s1783_s22  ;;  %800 = vrot.lane.b32.xlu1 %v793_v21, %s1783_s22 }
 0x325   : >> { %v855_v29 = vpop.permute.xlu0 %854  ;;  %v821_v30 = vpop.permute.xlu1 %820 }
 0x327   : >> { %818 = vrot.lane.b32.xlu0 %v811_v22, %s1785_s15  ;;  %816 = vrot.lane.b32.xlu1 %v810_v23, %s1785_s15 }
 0x32b   : >> { %852 = vrot.lane.b32.xlu0 %v845_v24, %s1784_s14  ;;  %850 = vrot.lane.b32.xlu1 %v844_v25, %s1784_s14 }
 0x32f   : >> { %677 = vrot.lane.b32.xlu0 %v1898_v0, %s1783_s22  ;;  %674 = vrot.lane.b32.xlu1 %v1912_v9, %s1783_s22 }
 0x333   : >> { %771 = vrot.lane.b32.xlu0 %v763_v26, %s1783_s22  ;;  %680 = vrot.lane.b32.xlu1 %v1906_v6, %s1783_s22 }
 0x337   : >> { %769 = vrot.lane.b32.xlu0 %v762_v27, %s1783_s22  ;;  %767 = vrot.lane.b32.xlu1 %v761_v28, %s1783_s22 }
 0x391   : >> { %v805_v31 = vpop.permute.xlu0 %804 }
 0x392   : >> { %v808_v41 = vsel %vm673_vm3, %v805_v31, %v787_v11 }
 0x393   : >> { %v861_v43 = vmul.f32 %v855_v29, %v808_v41  ;;  %v827_v51 = vmul.f32 %v821_v30, %v808_v41 }
 0x395   : >> { %v801_v32 = vpop.permute.xlu1 %800  ;;  %v803_v33 = vpop.permute.xlu0 %802 }
 0x396   : >> { %v807_v35 = vsel %vm673_vm3, %v803_v33, %v785_v12  ;;  %v806_v45 = vsel %vm673_vm3, %v801_v32, %v783_v13 }
 0x399   : >> { %v817_v34 = vpop.permute.xlu1 %816  ;;  %v819_v36 = vpop.permute.xlu0 %818 }
 0x39a   : >> { %v826_v37 = vmul.f32 %v819_v36, %v807_v35  ;;  %v825_v47 = vmul.f32 %v817_v34, %v806_v45 }
 0x39c   : >> { %833 = vrot.lane.b32.xlu0 %v826_v37, %s1784_s14 }
 0x39d   : >> { %v851_v38 = vpop.permute.xlu1 %850  ;;  %v853_v39 = vpop.permute.xlu0 %852 }
 0x39e   : >> { %v860_v40 = vmul.f32 %v853_v39, %v807_v35  ;;  %v859_v49 = vmul.f32 %v851_v38, %v806_v45 }
 0x3a0   : >> { %867 = vrot.lane.b32.xlu0 %v860_v40, %s1785_s15 }
 0x3a1   : >> { %v675_v42 = vpop.permute.xlu1 %674  ;;  %v678_v46 = vpop.permute.xlu0 %677 }
 0x3a2   : >> { %v676_v44 = vsel %vm673_vm3, %v675_v42, %v1912_v9  ;;  %v679_v48 = vsel %vm673_vm3, %v678_v46, %v1898_v0 }
 0x3a3   : >> { %683 = vrot.lane.b32.xlu1 %v676_v44, %s1783_s22  ;;  %v661_v44 = vadd.f32 %v1908_v7, %v1896_v62 }
 0x3a4   : >> { %869 = vrot.lane.b32.xlu0 %v861_v43, %s1785_s15 }
 0x3a5   : >> { %v681_v53 = vpop.permute.xlu1 %680  ;;  %v772_v59 = vpop.permute.xlu0 %771 }
 0x3a6   : >> { %v682_v55 = vsel %vm673_vm3, %v681_v53, %v1906_v6  ;;  %v778_v17 = vmul.f32 %v772_v59, %v1906_v6 }
 0x3a7   : >> { %831 = vrot.lane.b32.xlu1 %v825_v47, %s1784_s14 }
 0x3a8   : >> { %685 = vrot.lane.b32.xlu0 %v679_v48, %s1783_s22 }
 0x3a9   : >> { %v770_v60 = vpop.permute.xlu0 %769  ;;  %v768_v63 = vpop.permute.xlu1 %767 }
 0x3aa   : >> { %v776_v8 = vmul.f32 %v768_v63, %v1912_v9  ;;  %v777_v10 = vmul.f32 %v770_v60, %v1898_v0 }
 0x3ab   : >> { %865 = vrot.lane.b32.xlu1 %v859_v49, %s1785_s15 }
 0x3ac   : >> { %699 = vrot.lane.b32.xlu0 %v693_v50, %s1785_s15 }
 0x3af   : >> { %835 = vrot.lane.b32.xlu1 %v827_v51, %s1784_s14  ;;  %v2014_v51 = vpack.c.bf16 %v661_v44, %v661_v44 }
 0x3b0   : >> { %703 = vrot.lane.b32.xlu0 %v695_v52, %s1785_s15 }
 0x3b3   : >> { %687 = vrot.lane.b32.xlu1 %v682_v55, %s1783_s22 }
 0x3b4   : >> { %735 = vrot.lane.b32.xlu0 %v728_v54, %s1784_s14 }
 0x3b7   : >> { %701 = vrot.lane.b32.xlu1 %v694_v56, %s1785_s15  ;;  %s666_s15 = scalar_lea.vmem %s2131_s6, %s1918_s23  ;;  %s1788_s23 = smov 32  }
 0x3b8   : >> { %v667_v45 = vld [vmem:[%s666_s15] sm:$0xff]  ;;  %v668_v46 = vld [vmem:[%s666_s15 + $0x8] sm:$0xff]  ;;  %v669_v47 = vld [vmem:[%s666_s15 + $0x10] sm:$0x3] }
 0x3b9   : >> { %v670_v48 = vmul.f32 %v667_v45, %v1912_v9  ;;  %v671_v52 = vmul.f32 %v668_v46, %v1898_v0  ;;  %v672_v53 = vmul.f32 %v669_v47, %v1906_v6 }
 0x3bb   : >> { %733 = vrot.lane.b32.xlu1 %v727_v57, %s1784_s14 }
 0x3bf   : >> { %737 = vrot.lane.b32.xlu1 %v729_v58, %s1784_s14 }
 0x40e   : >> { %v834_v61 = vpop.permute.xlu0 %833 }
 0x40f   : >> { %v841_v11 = vadd.f32 %v834_v61, %v777_v10 }
 0x412   : >> { %v868_v1 = vpop.permute.xlu0 %867 }
 0x413   : >> { %v875_v15 = vadd.f32 %v868_v1, %v841_v11 }
 0x415   : >> { %v684_v2 = vpop.permute.xlu1 %683 }
 0x416   : >> { %v870_v3 = vpop.permute.xlu0 %869  ;;  %v689_v25 = vsel %vm673_vm3, %v684_v2, %v1912_v9 }
 0x419   : >> { %v832_v4 = vpop.permute.xlu1 %831 }
 0x41a   : >> { %v840_v12 = vadd.f32 %v832_v4, %v776_v8  ;;  %v686_v13 = vpop.permute.xlu0 %685 }
 0x41b   : >> { %v690_v27 = vsel %vm673_vm3, %v686_v13, %v1898_v0  ;;  %v989_v0 = vsel %vm987_vm5, %v2014_v51, 0 }
 0x41d   : >> { %v866_v14 = vpop.permute.xlu1 %865 }
 0x41e   : >> { %v874_v16 = vadd.f32 %v866_v14, %v840_v12  ;;  %v700_v21 = vpop.permute.xlu0 %699 }
 0x41f   : >> { %v708_v29 = vmul.f32 %v700_v21, %v689_v25 }
 0x420   : >> { %v1990_v18 = vpack.c.bf16 %v875_v15, %v874_v16 }
 0x421   : >> { %v836_v19 = vpop.permute.xlu1 %835 }
 0x422   : >> { %v842_v20 = vadd.f32 %v836_v19, %v778_v17  ;;  %885 = vrot.lane.b32.xlu1 %v1990_v18, %s1783_s22  ;;  %v704_v26 = vpop.permute.xlu0 %703 }
 0x424   : >> { %v876_v22 = vadd.f32 %v870_v3, %v842_v20 }
 0x425   : >> { %v688_v23 = vpop.permute.xlu1 %687 }
 0x426   : >> { %v1994_v24 = vpack.c.bf16 %v876_v22, %v876_v22  ;;  %v691_v31 = vsel %vm673_vm3, %v688_v23, %v1906_v6  ;;  %v736_v35 = vpop.permute.xlu0 %735 }
 0x427   : >> { %v710_v33 = vmul.f32 %v704_v26, %v691_v31  ;;  %v743_v37 = vmul.f32 %v736_v35, %v690_v27 }
 0x428   : >> { %887 = vrot.lane.b32.xlu0 %v1994_v24, %s1783_s22  ;;  %s1787_s22 = smov 65  }
 0x429   : >> { %v702_v28 = vpop.permute.xlu1 %701 }
 0x42a   : >> { %v709_v30 = vmul.f32 %v702_v28, %v690_v27 }
 0x42c   : >> { %716 = vrot.lane.b32.xlu1 %v709_v30, %s1786_s28  ;;  %714 = vrot.lane.b32.xlu0 %v708_v29, %s1786_s28 }
 0x42d   : >> { %v734_v32 = vpop.permute.xlu1 %733 }
 0x42e   : >> { %v742_v34 = vmul.f32 %v734_v32, %v689_v25 }
 0x430   : >> { %748 = vrot.lane.b32.xlu1 %v742_v34, %s1787_s22  ;;  %718 = vrot.lane.b32.xlu0 %v710_v33, %s1786_s28 }
 0x431   : >> { %v738_v36 = vpop.permute.xlu1 %737 }
 0x432   : >> { %v744_v38 = vmul.f32 %v738_v36, %v691_v31 }
 0x434   : >> { %752 = vrot.lane.b32.xlu1 %v744_v38, %s1787_s22  ;;  %750 = vrot.lane.b32.xlu0 %v743_v37, %s1787_s22 }
 0x494   : >> { %v886_v39 = vpop.permute.xlu1 %885 }
 0x495   : >> { %v897_v54 = vsel %vm889_vm4, %v886_v39, 0 }
 0x49a   : >> { %v888_v40 = vpop.permute.xlu0 %887 }
 0x49b   : >> { %1664 = vmatprep.subr.msk.bf16.mxu1 %vm889_vm4, %v888_v40  ;;  %v900_v41 = vsel %vm889_vm4, %v888_v40, 0 }
 0x49c   : >> { %1621 = vmatpush3.bf16.xpose.msra.mxu1 %v900_v41 }
 0x49d   : >> { %1665 = vmatprep.subr.msk.bf16.mxu1 %vm889_vm4, %v886_v39 }
 0x49e   : >> { %v717_v42 = vpop.permute.xlu1 %716  ;;  %v715_v43 = vpop.permute.xlu0 %714 }
 0x49f   : >> { %v724_v55 = vadd.f32 %v717_v42, %v671_v52  ;;  %v723_v56 = vadd.f32 %v715_v43, %v670_v48 }
 0x4a2   : >> { %v749_v49 = vpop.permute.xlu1 %748  ;;  %v719_v50 = vpop.permute.xlu0 %718 }
 0x4a3   : >> { %v725_v62 = vadd.f32 %v719_v50, %v672_v53  ;;  %v757_v57 = vadd.f32 %v749_v49, %v723_v56 }
 0x4a4   : >> { %1623 = vmatpush3.bf16.xpose.msra.mxu1 %v897_v54 }
 0x4a5   : >> { %1666 = vmatprep.subr.msk.bf16.mxu1 %vm987_vm5, %v2014_v51 }
 0x4a6   : >> { %v753_v7 = vpop.permute.xlu1 %752  ;;  %v751_v9 = vpop.permute.xlu0 %750 }
 0x4a7   : >> { %v759_v58 = vadd.f32 %v753_v7, %v725_v62  ;;  %v758_v59 = vadd.f32 %v751_v9, %v724_v55 }
 0x4a9   : >> { %v878_v60 = vpack.c.bf16 %v759_v58, %v759_v58  ;;  %v877_v61 = vpack.c.bf16 %v758_v59, %v757_v57 }
 0x4ab   : >> { %1624 = vmatprep.mubr.msk.bf16.mxu1 %vm889_vm4, %v877_v61 }
 0x4ac   : >> { %1625 = vmatmul.mubr.msk.bf16.vlgmr.msra.gmra.mxu1 %vm889_vm4, %v878_v60 }
 0x4ad   : >> { %1629 = vmatpush3.bf16.msra.mxu1 %v989_v0 }
 0x4ae   : >> { %1630 = vmatprep.subr.bf16.mxu1 %v1904_v5 }
 0x4b1   : >> { %1631 = vmatpush3.bf16.msra.mxu1 %v1904_v5 }
 0x56c   : >> { %v1626_v6 = vpop.f32.mrf.mxu1 }
 0x56d   : >> { %v958_v4 = vsel %vm957_vm7, %v1626_v6, -inf }
 0x56e   : >> { %v936_v63 = vpop.f32.mrf.mxu1 }
 0x56f   : >> { %v951_v1 = vsel %vm950_vm6, %v936_v63, -inf }
 0x570   : >> { %952 = vmax.xlane.f32.xlu0 %v951_v1  ;;  %v1627_v2 = vpop.f32.mrf.mxu1  ;;  %v1731_v1 = vld [vmem:[%s1277_s20 + $0x8] sm:$0xff]  }
 0x571   : >> { %v1732_v2 = vld [vmem:[%s1277_s20] sm:$0xff]  }
 0x572   : >> { %v939_v3 = vpop.f32.mrf.mxu1 }
 0x573   : >> { %v954_v8 = vsel %vm950_vm6, %v939_v3, -inf }
 0x574   : >> { %959 = vmax.xlane.f32.xlu0 %v958_v4  ;;  %955 = vmax.xlane.f32.xlu1 %v954_v8 }
 0x585   : >> { %1051 = vrot.lane.b32.xlu1 %v1990_v18, %s1788_s23 }
 0x589   : >> { %1047 = vrot.lane.b32.xlu1 %v877_v61, %s1789_s16  ;;  %v1730_v61 = vld [vmem:[%s1277_s20 + $0x10] sm:$0xff]  }
 0x58a   : >> { %1053 = vrot.lane.b32.xlu0 %v1994_v24, %s1788_s23 }
 0x58e   : >> { %1049 = vrot.lane.b32.xlu0 %v878_v60, %s1789_s16  ;;  %v1729_v60 = vld [vmem:[%s1277_s20 + $0x18] sm:$0xff]  }
 0x5f9   : >> { %v953_v10 = vpop.xlane.xlu0 %952 }
 0x5fa   : >> { %v961_v11 = vsub.f32 %v936_v63, %v953_v10 }
 0x5fc   : >> { %v964_v12 = vmul.f32 1.442695, %v961_v11 }
 0x5fd   : >> { %v960_v13 = vpop.xlane.xlu0 %959  ;;  %v956_v14 = vpop.xlane.xlu1 %955 }
 0x5fe   : >> { %v963_v15 = vsub.f32 %v1626_v6, %v960_v13  ;;  %v962_v16 = vsub.f32 %v939_v3, %v956_v14  ;;  %1733 = vpow2.f32 %v964_v12 }
 0x600   : >> { %v968_v17 = vmul.f32 1.442695, %v963_v15  ;;  %v966_v19 = vmul.f32 1.442695, %v962_v16 }
 0x601   : >> { %v1054_v20 = vpop.permute.xlu0 %1053  ;;  %v1052_v21 = vpop.permute.xlu1 %1051 }
 0x602   : >> { %1735 = vpow2.f32 %v968_v17  ;;  %1667 = vmatprep.subr.msk.bf16.mxu1 %vm889_vm4, %v1054_v20  ;;  %v1065_v26 = vsel %vm889_vm4, %v1054_v20, 0  ;;  %v1062_v28 = vsel %vm889_vm4, %v1052_v21, 0 }
 0x603   : >> { %1737 = vpow2.f32 %v966_v19 }
 0x605   : >> { %v1048_v27 = vpop.permute.xlu1 %1047  ;;  %v1050_v29 = vpop.permute.xlu0 %1049 }
 0x60b   : >> { %v2037_v18 = vpop.eup %1733 }
 0x60c   : >> { %v970_v58 = vsel %vm950_vm6, %v2037_v18, 0.0 }
 0x60f   : >> { %v2039_v22 = vpop.eup %1735 }
 0x610   : >> { %v1738_v23 = vpop.eup %1737  ;;  %v980_v24 = vpack.c.bf16 %v2039_v22, %v2039_v22  ;;  %v976_v59 = vsel %vm957_vm7, %v2039_v22, 0.0 }
 0x611   : >> { %v979_v25 = vpack.c.bf16 %v1738_v23, %v2037_v18  ;;  %v973_v57 = vsel %vm950_vm6, %v1738_v23, 0.0 }
 0x613   : >> { %1632 = vmatprep.mubr.msk.bf16.mxu1 %vm950_vm6, %v979_v25 }
 0x614   : >> { %1633 = vmatmul.mubr.msk.bf16.vlgmr.msra.gmra.mxu1 %vm950_vm6, %v980_v24 }
 0x615   : >> { %1637 = vmatpush3.bf16.xpose.msra.mxu1 %v1065_v26  ;;  %1640 = vmatprep.mubr.msk.bf16.mxu1 %vm889_vm4, %v1048_v27 }
 0x616   : >> { %1668 = vmatprep.subr.msk.bf16.mxu1 %vm889_vm4, %v1052_v21 }
 0x61d   : >> { %1639 = vmatpush3.bf16.xpose.msra.mxu1 %v1062_v28 }
 0x61e   : >> { %1652 = vmatprep.subr.bf16.mxu1 %v1729_v60 }
 0x624   : >> { %1641 = vmatmul.mubr.msk.bf16.vlgmr.msra.gmra.mxu1 %vm889_vm4, %v1050_v29 }
 0x625   : >> { %1653 = vmatpush3.bf16.msra.mxu1 %v1729_v60 }
 0x626   : >> { %1654 = vmatprep.subr.bf16.mxu1 %v1730_v61 }
 0x629   : >> { %1655 = vmatpush3.bf16.msra.mxu1 %v1730_v61 }
 0x62a   : >> { %1656 = vmatprep.subr.bf16.mxu1 %v1731_v1 }
 0x62d   : >> { %1657 = vmatpush3.bf16.msra.mxu1 %v1731_v1 }
 0x62e   : >> { %1658 = vmatprep.subr.bf16.mxu1 %v1732_v2 }
 0x631   : >> { %1659 = vmatpush3.bf16.msra.mxu1 %v1732_v2 }
 0x6d4   : >> { %v2051_v30 = vpop.f32.mrf.mxu1 }
 0x6d6   : >> { %v2053_v31 = vpop.f32.mrf.mxu1 }
 0x6d8   : >> { %v1635_v32 = vpop.f32.mrf.mxu1 }
 0x6da   : >> { %v2055_v33 = vpop.f32.mrf.mxu1 }
 0x6e4   : >> { %v1642_v34 = vpop.f32.mrf.mxu1 }
 0x6e5   : >> { %v1121_v35 = vsel %vm957_vm7, %v1642_v34, -inf }
 0x6e6   : >> { %1122 = vmax.xlane.f32.xlu0 %v1121_v35  ;;  %v1101_v36 = vpop.f32.mrf.mxu1 }
 0x6e7   : >> { %v1115_v37 = vsel %vm950_vm6, %v1101_v36, -inf }
 0x6e8   : >> { %1116 = vmax.xlane.f32.xlu1 %v1115_v37  ;;  %v1643_v38 = vpop.f32.mrf.mxu1 }
 0x6ea   : >> { %v1104_v39 = vpop.f32.mrf.mxu1 }
 0x6eb   : >> { %v1118_v40 = vsel %vm950_vm6, %v1104_v39, -inf }
 0x6ec   : >> { %1119 = vmax.xlane.f32.xlu0 %v1118_v40 }
 0x6f9   : >> { %1148 = vrot.lane.b32.xlu1 %v2014_v51, %s1789_s16 }
 0x702   : >> { %1146 = vrot.lane.b32.xlu0 %v1904_v5, %s1789_s16 }
 0x76f   : >> { %v1123_v41 = vpop.xlane.xlu0 %1122 }
 0x770   : >> { %v1126_v42 = vsub.f32 %v1642_v34, %v1123_v41 }
 0x771   : >> { %v1117_v43 = vpop.xlane.xlu1 %1116 }
 0x772   : >> { %v1124_v44 = vsub.f32 %v1101_v36, %v1117_v43  ;;  %v1131_v45 = vmul.f32 1.442695, %v1126_v42  ;;  %v1229_v43 = vld [vmem:[#allocation3] sm:$0xff] }
 0x774   : >> { %v1127_v46 = vmul.f32 1.442695, %v1124_v44 }
 0x775   : >> { %v1149_v47 = vpop.permute.xlu1 %1148  ;;  %v1120_v48 = vpop.xlane.xlu0 %1119 }
 0x776   : >> { %1739 = vpow2.f32 %v1127_v46  ;;  %v1158_v49 = vsel %vm987_vm5, %v1149_v47, 0  ;;  %v1125_v50 = vsub.f32 %v1104_v39, %v1120_v48  ;;  %1669 = vmatprep.subr.msk.bf16.mxu0 %vm987_vm5, %v1149_v47  ;;  %v1249_v46 = vld [vmem:[#allocation4] sm:$0xff]  ;;  %v1231_v47 = vld [vmem:[#allocation3 + $0x10] sm:$0x3] }
 0x777   : >> { %1645 = vmatpush3.bf16.msra.mxu0 %v1158_v49  ;;  %1741 = vpow2.f32 %v1131_v45 }
 0x778   : >> { %v1129_v51 = vmul.f32 1.442695, %v1125_v50 }
 0x779   : >> { %v1147_v52 = vpop.permute.xlu0 %1146 }
 0x77a   : >> { %1743 = vpow2.f32 %v1129_v51  ;;  %1646 = vmatprep.subr.bf16.mxu0 %v1147_v52 }
 0x77b   : >> { %1647 = vmatpush3.bf16.msra.mxu0 %v1147_v52  ;;  %v1251_v52 = vld [vmem:[#allocation4 + $0x10] sm:$0x3] }
 0x783   : >> { %v1740_v5 = vpop.eup %1739 }
 0x784   : >> { %v1133_v53 = vsel %vm950_vm6, %v1740_v5, 0.0  ;;  %v1742_v54 = vpop.eup %1741 }
 0x785   : >> { %1134 = vadd.xlane.f32.xlu1 %v1133_v53  ;;  %v1139_v56 = vsel %vm957_vm7, %v1742_v54, 0.0  ;;  %v1143_v9 = vpack.c.bf16 %v1742_v54, %v1742_v54 }
 0x787   : >> { %v1744_v55 = vpop.eup %1743 }
 0x788   : >> { %v1136_v62 = vsel %vm950_vm6, %v1744_v55, 0.0  ;;  %v1142_v7 = vpack.c.bf16 %v1744_v55, %v1740_v5  ;;  %v1230_v5 = vld [vmem:[#allocation3 + $0x8] sm:$0xff] }
 0x789   : >> { %1140 = vadd.xlane.f32.xlu1 %v1139_v56  ;;  %1137 = vadd.xlane.f32.xlu0 %v1136_v62  ;;  %v1250_v62 = vld [vmem:[#allocation4 + $0x8] sm:$0xff] }
 0x78a   : >> { %1648 = vmatprep.mubr.msk.bf16.mxu0 %vm950_vm6, %v1142_v7 }
 0x78b   : >> { %1649 = vmatmul.mubr.msk.bf16.vlgmr.msra.gmra.mxu0 %vm950_vm6, %v1143_v9 }
 0x78d   : >> { %974 = vadd.xlane.f32.xlu1 %v973_v57  ;;  %971 = vadd.xlane.f32.xlu0 %v970_v58  ;;  %v1272_v57 = vld [vmem:[%s1876_s29 + $0x10] sm:$0x3] }
 0x791   : >> { %977 = vadd.xlane.f32.xlu0 %v976_v59  ;;  %v1270_v59 = vld [vmem:[%s1876_s29] sm:$0xff] }
 0x80e   : >> { %v1135_v0 = vpop.xlane.xlu1 %1134 }
 0x80f   : >> { %1745 = vrcp.f32 %v1135_v0 }
 0x812   : >> { %v1141_v6 = vpop.xlane.xlu1 %1140  ;;  %v1138_v63 = vpop.xlane.xlu0 %1137 }
 0x813   : >> { %1747 = vrcp.f32 %v1141_v6 }
 0x814   : >> { %1749 = vrcp.f32 %v1138_v63  ;;  %v1271_v63 = vld [vmem:[%s1876_s29 + $0x8] sm:$0xff] }
 0x816   : >> { %v972_v17 = vpop.xlane.xlu0 %971  ;;  %v975_v19 = vpop.xlane.xlu1 %974 }
 0x817   : >> { %1751 = vrcp.f32 %v972_v17 }
 0x818   : >> { %1753 = vrcp.f32 %v975_v19 }
 0x81a   : >> { %v978_v20 = vpop.xlane.xlu0 %977 }
 0x81b   : >> { %1755 = vrcp.f32 %v978_v20 }
 0x81c   : >> { %v1746_v4 = vpop.eup %1745 }
 0x820   : >> { %v1748_v12 = vpop.eup %1747 }
 0x821   : >> { %v1750_v13 = vpop.eup %1749 }
 0x824   : >> { %v1752_v18 = vpop.eup %1751 }
 0x825   : >> { %v1754_v21 = vpop.eup %1753  ;;  %v1042_v22 = vmul.f32 %v1752_v18, %v2053_v31 }
 0x826   : >> { %v1043_v29 = vmul.f32 %v1754_v21, %v2055_v33 }
 0x828   : >> { %v1756_v23 = vpop.eup %1755 }
 0x829   : >> { %v1044_v28 = vmul.f32 %v1756_v23, %v2051_v30 }
 0x84b   : >> { %v1650_v3 = vpop.f32.mrf.mxu0 }
 0x84c   : >> { %v1213_v15 = vmul.f32 %v1748_v12, %v1650_v3 }
 0x84d   : >> { %v1194_v8 = vpop.f32.mrf.mxu0 }
 0x84e   : >> { %v1211_v10 = vmul.f32 %v1746_v4, %v1194_v8 }
 0x84f   : >> { %v1651_v11 = vpop.f32.mrf.mxu0 }
 0x850   : >> { %1217 = vrot.lane.b32.xlu1 %v1211_v10, %s1788_s23  ;;  %v1790_v10 = vmov (%p484_p4), 0  }
 0x851   : >> { %v1197_v14 = vpop.f32.mrf.mxu0  ;;  %1758 = vset.pattern.permute.xlu1 (%p484_p4), %v1790_v10  ;;  %1757 = vset.pattern.permute.xlu0 (%p484_p4), %v1790_v10 }
 0x852   : >> { %v1212_v16 = vmul.f32 %v1750_v13, %v1197_v14 }
 0x854   : >> { %1221 = vrot.lane.b32.xlu1 %v1213_v15, %s1788_s23  ;;  %1219 = vrot.lane.b32.xlu0 %v1212_v16, %s1788_s23 }
 0x8c2   : >> { %v1218_v24 = vpop.permute.xlu1 %1217 }
 0x8c3   : >> { %v1226_v25 = vsel %vm889_vm4, %v1042_v22, %v1218_v24 }
 0x8c4   : >> { %v1233_v26 = vsel %vm1232_vm8, %v1226_v25, 0.0  ;;  %v1252_v27 = vmul.f32 %v1226_v25, %v1226_v25 }
 0x8c5   : >> { %1234 = vadd.xlane.f32.xlu1 %v1233_v26 }
 0x8c6   : >> { %v1222_v32 = vpop.permute.xlu1 %1221  ;;  %v1220_v34 = vpop.permute.xlu0 %1219  ;;  %v1255_v36 = vsel %vm1232_vm8, %v1252_v27, 0.0 }
 0x8c7   : >> { %v1228_v35 = vsel %vm889_vm4, %v1044_v28, %v1222_v32  ;;  %v1227_v31 = vsel %vm889_vm4, %v1043_v29, %v1220_v34 }
 0x8c8   : >> { %v1274_v37 = vpack.c.bf16 %v1228_v35, %v1228_v35  ;;  %v1273_v38 = vpack.c.bf16 %v1227_v31, %v1226_v25  ;;  %v1240_v39 = vsel %vm1239_vm9, %v1228_v35, 0.0  ;;  %v1254_v40 = vmul.f32 %v1228_v35, %v1228_v35 }
 0x8c9   : >> { %1256 = vadd.xlane.f32.xlu1 %v1255_v36  ;;  %1241 = vadd.xlane.f32.xlu0 %v1240_v39  ;;  %v1236_v33 = vsel %vm1232_vm8, %v1227_v31, 0.0  ;;  %v1253_v41 = vmul.f32 %v1227_v31, %v1227_v31 }
 0x8ca   : >> { %1660 = vmatprep.mubr.msk.bf16.mxu1 %vm1232_vm8, %v1273_v38  ;;  %v1261_v30 = vsel %vm1239_vm9, %v1254_v40, 0.0  ;;  %v1584_v40 = vld [vmem:[%s2129_s4] ss:$0 sm:$0xff] (%p484_p4) }
 0x8cb   : >> { %1661 = vmatmul.mubr.msk.bf16.vlgmr.msra.gmra.mxu1 %vm1232_vm8, %v1274_v37  ;;  %v1258_v42 = vsel %vm1232_vm8, %v1253_v41, 0.0 }
 0x8cd   : >> { %1262 = vadd.xlane.f32.xlu1 %v1261_v30  ;;  %1237 = vadd.xlane.f32.xlu0 %v1236_v33 }
 0x8d1   : >> { %1259 = vadd.xlane.f32.xlu0 %v1258_v42 }
 0x94e   : >> { %v1235_v44 = vpop.xlane.xlu1 %1234 }
 0x94f   : >> { %v1243_v45 = vadd.f32 %v1235_v44, %v1229_v43  ;;  %v1585_v44 = vld [vmem:[%s2130_s5] ss:$0 sm:$0xff] (%p484_p4) }
 0x951   : >> { %1246 = vst.msk [vmem:[#allocation3] sm:$0xff] %vm474_vm0, %v1243_v45 }
 0x952   : >> { %v1257_v48 = vpop.xlane.xlu1 %1256  ;;  %v1242_v49 = vpop.xlane.xlu0 %1241 }
 0x953   : >> { %v1264_v50 = vadd.f32 %v1257_v48, %v1249_v46  ;;  %v1245_v51 = vadd.f32 %v1242_v49, %v1231_v47 }
 0x955   : >> { %1267 = vst.msk [vmem:[#allocation4] sm:$0xff] %vm474_vm0, %v1264_v50 }
 0x956   : >> { %1248 = vst.msk [vmem:[#allocation3 + $0x10] sm:$0x3] %vm477_vm1, %v1245_v51  ;;  %v1263_v53 = vpop.xlane.xlu1 %1262  ;;  %v1238_v54 = vpop.xlane.xlu0 %1237 }
 0x957   : >> { %v1266_v55 = vadd.f32 %v1263_v53, %v1251_v52  ;;  %v1244_v56 = vadd.f32 %v1238_v54, %v1230_v5 }
 0x958   : > { %v1370_v8 = vld [vmem:[#allocation3] sm:$0xff] (%p484_p4) }
 0x959   : >> { %1269 = vst.msk [vmem:[#allocation4 + $0x10] sm:$0x3] %vm477_vm1, %v1266_v55  ;;  %v1373_v13 = vmul.f32 (%p484_p4), 0.0078125, %v1370_v8 }
 0x95a   : >> { %1247 = vst.msk [vmem:[#allocation3 + $0x8] sm:$0xff] %vm474_vm0, %v1244_v56  ;;  %v1260_v7 = vpop.xlane.xlu0 %1259 }
 0x95b   : >> { %v1265_v9 = vadd.f32 %v1260_v7, %v1250_v62  ;;  %v1382_v21 = vmul.f32 (%p484_p4), %v1373_v13, %v1373_v13 }
 0x95c   : > { %v1376_v14 = vld [vmem:[#allocation4] sm:$0xff] (%p484_p4) }
 0x95d   : >> { %1268 = vst.msk [vmem:[#allocation4 + $0x8] sm:$0xff] %vm474_vm0, %v1265_v9  ;;  %v1372_v3 = vld [vmem:[#allocation3 + $0x10] sm:$0x3] (%p484_p4)  ;;  %v1379_v17 = vmul.f32 (%p484_p4), 0.0078125, %v1376_v14 }
 0x95e   : > { %v1375_v11 = vmul.f32 (%p484_p4), 0.0078125, %v1372_v3 }
 0x95f   : > { %v1385_v24 = vsub.f32 (%p484_p4), %v1379_v17, %v1382_v21 }
 0x960   : > { %v1378_v4 = vld [vmem:[#allocation4 + $0x10] sm:$0x3] (%p484_p4)  ;;  %v1384_v18 = vmul.f32 (%p484_p4), %v1375_v11, %v1375_v11 }
 0x961   : > { %v1381_v12 = vmul.f32 (%p484_p4), 0.0078125, %v1378_v4  ;;  %v1371_v15 = vld [vmem:[#allocation3 + $0x8] sm:$0xff] (%p484_p4)  ;;  %v1388_v27 = vadd.f32 (%p484_p4), 1e-05, %v1385_v24 }
 0x962   : > { %v1374_v19 = vmul.f32 (%p484_p4), 0.0078125, %v1371_v15 }
 0x963   : > { %v1387_v23 = vsub.f32 (%p484_p4), %v1381_v12, %v1384_v18 }
 0x964   : > { %v1377_v16 = vld [vmem:[#allocation4 + $0x8] sm:$0xff] (%p484_p4)  ;;  %v1383_v22 = vmul.f32 (%p484_p4), %v1374_v19, %v1374_v19 }
 0x965   : > { %v1380_v20 = vmul.f32 (%p484_p4), 0.0078125, %v1377_v16  ;;  %v1390_v26 = vadd.f32 (%p484_p4), 1e-05, %v1387_v23 }
 0x967   : > { %v1386_v25 = vsub.f32 (%p484_p4), %v1380_v20, %v1383_v22  ;;  %1759 = vrsqrt.f32 (%p484_p4), %v1390_v26 }
 0x968   : > { %1761 = vrsqrt.f32 (%p484_p4), %v1388_v27 }
 0x969   : > { %v1389_v28 = vadd.f32 (%p484_p4), 1e-05, %v1386_v25 }
 0x96b   : > { %1763 = vrsqrt.f32 (%p484_p4), %v1389_v28 }
 0x974   : > { %v1760_v29 = vpop.eup (%p484_p4), %1759 }
 0x975   : > { %v1762_v32 = vpop.eup (%p484_p4), %1761  ;;  %1409 = vperm.xlu1 (%p484_p4), %1758, %v1760_v29   ;;  %v1417_v31 = vmul.f32 (%p484_p4), %v1760_v29, %v1375_v11 }
 0x976   : > { %1399 = vperm.xlu0 (%p484_p4), %1757, %v1762_v32   ;;  %v1415_v34 = vmul.f32 (%p484_p4), %v1762_v32, %v1373_v13 }
 0x978   : > { %v1764_v35 = vpop.eup (%p484_p4), %1763 }
 0x979   : > { %1421 = vperm.xlu1 (%p484_p4), %1758, %v1415_v34   ;;  %v1416_v36 = vmul.f32 (%p484_p4), %v1764_v35, %v1374_v19 }
 0x97a   : > { %1404 = vperm.xlu0 (%p484_p4), %1757, %v1764_v35  }
 0x97d   : > { %1431 = vperm.xlu1 (%p484_p4), %1758, %v1417_v31  }
 0x97e   : > { %1426 = vperm.xlu0 (%p484_p4), %1757, %v1416_v36  }
 0x98b   : >> { %v1662_v58 = vpop.f32.mrf.mxu1 }
 0x98c   : >> { %v1366_v60 = vadd.f32 %v1662_v58, %v1272_v57 }
 0x98d   : >> { %v1350_v61 = vpop.f32.mrf.mxu1 }
 0x98e   : >> { %1369 = vst [vmem:[%s1876_s29 + $0x10] sm:$0x3] %v1366_v60  ;;  %v1364_v0 = vadd.f32 %v1350_v61, %v1270_v59 }
 0x98f   : >> { %v1663_v6 = vpop.f32.mrf.mxu1 }
 0x990   : >> { %1367 = vst [vmem:[%s1876_s29] sm:$0xff] %v1364_v0  ;;  %486 = sbr.rel (!%p484_p4) target bundleno = 330 (0x14a), region = 114 }
 0x991   : >> { %v1353_v1 = vpop.f32.mrf.mxu1 }
 0x992   : >> { %v1365_v2 = vadd.f32 %v1353_v1, %v1271_v63 }
 0x994   : >> { %1368 = vst [vmem:[%s1876_s29 + $0x8] sm:$0xff] %v1365_v2 }
 0x995   : > { %v1396_v43 = vld [vmem:[%s1876_s29 + $0x10] sm:$0x3] }
 0x997   : > { %v1394_v39 = vld [vmem:[%s1876_s29] sm:$0xff] }
 0x99b   : > { %v1395_v45 = vld [vmem:[%s1876_s29 + $0x8] sm:$0xff] }
 0x9f0   : > { %v1410_v37 = vpop.permute.xlu1 %1409 }
 0x9f1   : > { %v1400_v38 = vpop.permute.xlu0 %1399  ;;  %v1414_v48 = vmul.f32 %v1410_v37, %v1396_v43 }
 0x9f2   : > { %v1412_v33 = vmul.f32 %v1400_v38, %v1394_v39 }
 0x9f4   : > { %v1422_v30 = vpop.permute.xlu1 %1421 }
 0x9f5   : > { %v1405_v41 = vpop.permute.xlu0 %1404  ;;  %v1440_v42 = vmul.f32 %v1584_v40, %v1422_v30 }
 0x9f6   : > { %v1413_v52 = vmul.f32 %v1405_v41, %v1395_v45 }
 0x9f7   : > { %v1443_v46 = vsub.f32 %v1412_v33, %v1440_v42 }
 0x9f8   : > { %v1432_v47 = vpop.permute.xlu1 %1431 }
 0x9f9   : > { %v1453_v49 = vadd.f32 %v1585_v44, %v1443_v46  ;;  %v1427_v50 = vpop.permute.xlu0 %1426  ;;  %v1442_v51 = vmul.f32 %v1584_v40, %v1432_v47 }
 0x9fa   : > { %v1441_v5 = vmul.f32 %v1584_v40, %v1427_v50 }
 0x9fb   : > { %1456 = vst [vmem:[%s1876_s29] sm:$0xff] %v1453_v49  ;;  %v1445_v53 = vsub.f32 %v1414_v48, %v1442_v51 }
 0x9fc   : > { %v1444_v54 = vsub.f32 %v1413_v52, %v1441_v5 }
 0x9fd   : > { %v1455_v55 = vadd.f32 %v1585_v44, %v1445_v53 }
 0x9fe   : > { %v1454_v56 = vadd.f32 %v1585_v44, %v1444_v54 }
 0x9ff   : > { %1458 = vst [vmem:[%s1876_s29 + $0x10] sm:$0x3] %v1455_v55 }
 0xa00   : > { %1457 = vst [vmem:[%s1876_s29 + $0x8] sm:$0xff] %v1454_v56 }
 0xa01 PF: > { %s22_s21 = sadd.s32 1, %s1775_s21  }
 0xa02   : > { %p19_p5 = scmp.ge.s32.totalorder %s22_s21, 4  }
 0xa04   :  { %21 = sbr.rel (!%p19_p5) target bundleno = 1 (0x1), region = 125 }

</bundles_post_ra>
